<compile_context>
chip_gen: v7x
topology: tpu7x:2x2x1
jax: 0.10.0
libtpu: 0.0.40
codegen_flags: <defaults>
</compile_context>

<pallas_src>
import numpy as np
import jax
import jax.numpy as jnp
from jax.experimental import pallas as pl
from jax.experimental.pallas import tpu as pltpu

SIGMA_FORCING = 0.08  # fixed in the reference module


def _ricker_kernel(forcing_ref, noise_ref, params_ref, out_ref, jac_ref, a4_ref):
    """forcing_ref: (1,T)  noise_ref: (2,T) unit normals  params_ref: (2,8)
       out_ref: (2,T)      jac_ref: (4,T) rows [j00,j01,j10,j11]
       a4_ref:  (4,T) scratch: rows 0:2 = A = alpha*(1+z), rows 2:4 = species-swapped A."""
    # params columns: [alpha, beta, gamma, bx, cx, init, 0, 0]  (row = species)
    alpha = params_ref[:, 0:1]   # (2,1)
    beta  = params_ref[:, 1:2]
    gamma = params_ref[:, 2:3]
    bx    = params_ref[:, 3:4]
    cx    = params_ref[:, 4:5]
    init  = params_ref[:, 5:6]

    # Loop-invariant products (no f32 FMA on the VPU -> every removed vmul
    # shortens the serial per-iteration chain).
    ab = alpha * beta            # (2,1)
    ag = alpha * gamma           # (2,1)

    def _swap2(v):               # swap the two species rows (one-time uses only)
        return jnp.concatenate([v[1:2, :], v[0:1, :]], axis=0)

    absw = _swap2(ab)
    agsw = _swap2(ag)

    # Vectorized pre-pass: z[s,t] = bx_s*f_t + cx_s*f_t^2 + 0.08*eps[s,t],
    # A[s,t] = alpha_s*(1+z[s,t]).  Noise scale folded in here (VPU mul under slack).
    f = forcing_ref[...]                                         # (1,T)
    A = alpha * (1.0 + bx * f + cx * (f * f)
                 + SIGMA_FORCING * noise_ref[...])               # (2,T)
    a4_ref[...] = jnp.concatenate([A, _swap2(A)], axis=0)        # (4,T), one store

    T = out_ref.shape[1]

    # torch initializes every timestep to the initial conditions, then overwrites
    # columns 1..T-1 — so only column 0 needs the init value.
    out_ref[:, 0:1] = init

    # Serial Ricker recurrence, fully unrolled (static T): every index below is a
    # compile-time constant.  Carry both the state and its species-swap so the
    # loop body has no sublane permute on the carried critical path.
    s = init                                                      # (2,1)
    sw = _swap2(init)                                             # (2,1)
    for i in range(T - 1):
        a4 = a4_ref[:, i:i + 1]                                   # (4,1) single load
        a_i, asw_i = a4[0:2, :], a4[2:4, :]
        # exp(alpha_s*(1 - beta_s*x_s - gamma_s*x_other + z_s))
        new_s  = s  * jnp.exp(a_i   - ab   * s  - ag   * sw)
        new_sw = sw * jnp.exp(asw_i - absw * sw - agsw * s)
        out_ref[:, i + 1:i + 2] = new_s                           # 1 store/iter
        s, sw = new_s, new_sw

    # Post-loop vectorized Jacobian pass (closed form, replaces
    # torch.autograd.functional.jacobian):
    #   dF_s/dx_s     = e_s * (1 - alpha_s*beta_s*x_s)
    #   dF_s/dx_other = -alpha_s*gamma_s*x_s*e_s
    # Recompute e over all steps from out and A (numerically safe; no division).
    X  = out_ref[...]                                             # (2,T)
    Xs = _swap2(X)
    ex = jnp.exp(A - ab * X - ag * Xs)                            # (2,T)
    jd = ex * (1.0 - ab * X)                                      # rows [j00 ; j11]
    jo = -(ag * X) * ex                                           # rows [j01 ; j10]
    jac_ref[...] = jnp.concatenate(                               # (4,T), one store
        [jd[0:1, :], jo[0:1, :], jo[1:2, :], jd[1:2, :]], axis=0)
    # (column T-1 of jac_ref is unused and sliced off in the wrapper)


@jax.jit
def ricker_forward_pallas(forcing, noise_eps, params_mat):
    """forcing: (T,) f32, noise_eps: (2,T) unit normals, params_mat: (2,8) f32.
       Returns (out (2,T), jacobians (T-1,2,2)) matching the torch module."""
    T = int(forcing.shape[0])
    forcing2d = forcing.reshape(1, T).astype(jnp.float32)
    noise = noise_eps.astype(jnp.float32)
    params_mat = params_mat.astype(jnp.float32)

    out, jac_packed = pl.pallas_call(
        _ricker_kernel,
        out_shape=(
            jax.ShapeDtypeStruct((2, T), jnp.float32),
            jax.ShapeDtypeStruct((4, T), jnp.float32),
        ),
        in_specs=[
            pl.BlockSpec(memory_space=pltpu.MemorySpace.VMEM),
            pl.BlockSpec(memory_space=pltpu.MemorySpace.VMEM),
            pl.BlockSpec(memory_space=pltpu.MemorySpace.VMEM),
        ],
        out_specs=(
            pl.BlockSpec(memory_space=pltpu.MemorySpace.VMEM),
            pl.BlockSpec(memory_space=pltpu.MemorySpace.VMEM),
        ),
        scratch_shapes=[pltpu.VMEM((4, T), jnp.float32)],   # [A ; A swapped]
    )(forcing2d, noise, params_mat)

    # (4, T-1) -> (T-1, 2, 2); the only remaining wrapper op, fused under jit.
    jacobians = jnp.transpose(jac_packed[:, : T - 1]).reshape(T - 1, 2, 2)
    return out, jacobians


class RickerPredationPallas:
    """Mirror of the torch module's constructor / forward (noise=None path)."""

    def __init__(self, initial_conditions, params, forcing_params, noise=None):
        self.initial_conditions = initial_conditions
        self.params = dict(params)
        self.resolution = forcing_params["resolution"]
        self.phase_shift = forcing_params["phase_shift"]
        p = self.params
        i1 = float(initial_conditions["species1"]())
        i2 = float(initial_conditions["species2"]())
        # row = species; columns = [alpha, beta, gamma, bx, cx, init, 0, 0]
        self.params_mat = jnp.array(
            [[p["alpha1"], p["beta1"], p["gamma1"], p["bx1"], p["cx1"], i1, 0.0, 0.0],
             [p["alpha2"], p["beta2"], p["gamma2"], p["bx2"], p["cx2"], i2, 0.0, 0.0]],
            dtype=jnp.float32)

    def simulate_forcing(self, timesteps):
        freq = timesteps / self.resolution
        x = np.arange(timesteps)
        y = np.sin(2 * np.pi * freq * (x / timesteps) + np.pi * self.phase_shift)
        return jnp.asarray(np.round(y, 4), dtype=jnp.float32)

    def forward(self, forcing, noise_eps):
        """noise_eps: (2, T) unit normals (scaled by 0.08 inside the kernel)."""
        out, self.jacobians = ricker_forward_pallas(forcing, noise_eps, self.params_mat)
        return out


def _ricker_forward_ref(forcing, noise_eps, params_mat):
    """Pure-numpy reference (python loop) for correctness checking."""
    T = forcing.shape[0]
    p = np.asarray(params_mat, dtype=np.float32)            # (2,8)
    alpha, beta, gamma = p[:, 0], p[:, 1], p[:, 2]
    bx, cx, init = p[:, 3], p[:, 4], p[:, 5]
    f = np.asarray(forcing, np.float32)
    eps = np.asarray(noise_eps, np.float32)                  # (2,T)
    z = (bx[:, None] * f[None, :] + cx[:, None] * (f * f)[None, :]
         + SIGMA_FORCING * eps)                              # (2,T)
    out = np.tile(init[:, None], (1, T)).astype(np.float32)
    jac = np.zeros((T - 1, 2, 2), np.float32)
    for i in range(T - 1):
        s = out[:, i]
        swp = s[::-1]
        ex = np.exp(alpha * (1.0 - beta * s - gamma * swp + z[:, i])).astype(np.float32)
        out[:, i + 1] = s * ex
        jac[i, 0, 0] = ex[0] * (1.0 - alpha[0] * beta[0] * s[0])
        jac[i, 0, 1] = -alpha[0] * gamma[0] * s[0] * ex[0]
        jac[i, 1, 0] = -alpha[1] * gamma[1] * s[1] * ex[1]
        jac[i, 1, 1] = ex[1] * (1.0 - alpha[1] * beta[1] * s[1])
    return out, jac


if __name__ == "__main__":
    T = 16  # sequence length (num_steps)
    params = {"alpha1": 0.5, "beta1": 0.2, "gamma1": 0.1, "bx1": 0.3, "cx1": 0.05,
              "alpha2": 0.4, "beta2": 0.25, "gamma2": 0.08, "bx2": 0.2, "cx2": 0.03}
    initial_conditions = {"species1": lambda: 0.8, "species2": lambda: 0.9}
    forcing_params = {"resolution": T, "phase_shift": 0.0}

    model = RickerPredationPallas(initial_conditions, params, forcing_params, noise=None)

    key = jax.random.PRNGKey(0)
    k_noise, k_force = jax.random.split(key)
    forcing = model.simulate_forcing(T) + 0.01 * jax.random.normal(k_force, (T,), jnp.float32)
    noise_eps = jax.random.normal(k_noise, (2, T), jnp.float32)  # unit normals; scaled by 0.08 in-kernel

    out = model.forward(forcing, noise_eps)
    out = jax.block_until_ready(out)
    jac = jax.block_until_ready(model.jacobians)

    out_ref, jac_ref = _ricker_forward_ref(forcing, noise_eps, model.params_mat)
    np.testing.assert_allclose(np.asarray(out), out_ref, rtol=1e-3, atol=1e-3)
    np.testing.assert_allclose(np.asarray(jac), jac_ref, rtol=1e-3, atol=1e-3)
    assert out.shape == (2, T) and jac.shape == (T - 1, 2, 2)

    print("KERNEL_OK")
</pallas_src>

<mosaic_0001>
module attributes {stable_mosaic.version = 11 : i64} {
  func.func @_ricker_kernel(%arg0: memref<1x16xf32, #tpu.memory_space<vmem>>, %arg1: memref<2x16xf32, #tpu.memory_space<vmem>>, %arg2: memref<2x8xf32, #tpu.memory_space<vmem>>, %arg3: memref<2x16xf32, #tpu.memory_space<vmem>>, %arg4: memref<4x16xf32, #tpu.memory_space<vmem>>, %arg5: memref<4x16xf32, #tpu.memory_space<vmem>>) attributes {dimension_semantics = [], scalar_prefetch = 0 : i64, scratch_operands = 1 : i64, tpu.core_type = #tpu.core_type<tc>} {
    %c0 = arith.constant 0 : index
    %c0_0 = arith.constant 0 : index
    %0 = vector.load %arg2[%c0, %c0_0] : memref<2x8xf32, #tpu.memory_space<vmem>>, vector<2x1xf32>
    %c0_1 = arith.constant 0 : index
    %c1 = arith.constant 1 : index
    %1 = vector.load %arg2[%c0_1, %c1] : memref<2x8xf32, #tpu.memory_space<vmem>>, vector<2x1xf32>
    %c0_2 = arith.constant 0 : index
    %c2 = arith.constant 2 : index
    %2 = vector.load %arg2[%c0_2, %c2] : memref<2x8xf32, #tpu.memory_space<vmem>>, vector<2x1xf32>
    %c0_3 = arith.constant 0 : index
    %c3 = arith.constant 3 : index
    %3 = vector.load %arg2[%c0_3, %c3] : memref<2x8xf32, #tpu.memory_space<vmem>>, vector<2x1xf32>
    %c0_4 = arith.constant 0 : index
    %c4 = arith.constant 4 : index
    %4 = vector.load %arg2[%c0_4, %c4] : memref<2x8xf32, #tpu.memory_space<vmem>>, vector<2x1xf32>
    %c0_5 = arith.constant 0 : index
    %c5 = arith.constant 5 : index
    %5 = vector.load %arg2[%c0_5, %c5] : memref<2x8xf32, #tpu.memory_space<vmem>>, vector<2x1xf32>
    %6 = arith.mulf %0, %1 : vector<2x1xf32>
    %7 = arith.mulf %0, %2 : vector<2x1xf32>
    %8 = vector.extract_strided_slice %6 {offsets = [1, 0], sizes = [1, 1], strides = [1, 1]} : vector<2x1xf32> to vector<1x1xf32>
    %9 = vector.extract_strided_slice %6 {offsets = [0, 0], sizes = [1, 1], strides = [1, 1]} : vector<2x1xf32> to vector<1x1xf32>
    %10 = tpu.concatenate %8, %9 in 0 : vector<1x1xf32>, vector<1x1xf32> -> vector<2x1xf32>
    %11 = vector.extract_strided_slice %7 {offsets = [1, 0], sizes = [1, 1], strides = [1, 1]} : vector<2x1xf32> to vector<1x1xf32>
    %12 = vector.extract_strided_slice %7 {offsets = [0, 0], sizes = [1, 1], strides = [1, 1]} : vector<2x1xf32> to vector<1x1xf32>
    %13 = tpu.concatenate %11, %12 in 0 : vector<1x1xf32>, vector<1x1xf32> -> vector<2x1xf32>
    %c0_6 = arith.constant 0 : index
    %c0_7 = arith.constant 0 : index
    %14 = vector.load %arg0[%c0_6, %c0_7] : memref<1x16xf32, #tpu.memory_space<vmem>>, vector<1x16xf32>
    %15 = vector.broadcast %3 : vector<2x1xf32> to vector<2x16xf32>
    %16 = vector.broadcast %14 : vector<1x16xf32> to vector<2x16xf32>
    %17 = arith.mulf %15, %16 : vector<2x16xf32>
    %cst = arith.constant 1.000000e+00 : f32
    %18 = vector.broadcast %cst : f32 to vector<2x16xf32>
    %19 = arith.addf %18, %17 : vector<2x16xf32>
    %20 = arith.mulf %14, %14 : vector<1x16xf32>
    %21 = vector.broadcast %4 : vector<2x1xf32> to vector<2x16xf32>
    %22 = vector.broadcast %20 : vector<1x16xf32> to vector<2x16xf32>
    %23 = arith.mulf %21, %22 : vector<2x16xf32>
    %24 = arith.addf %19, %23 : vector<2x16xf32>
    %c0_8 = arith.constant 0 : index
    %c0_9 = arith.constant 0 : index
    %25 = vector.load %arg1[%c0_8, %c0_9] : memref<2x16xf32, #tpu.memory_space<vmem>>, vector<2x16xf32>
    %cst_10 = arith.constant 8.000000e-02 : f32
    %26 = vector.broadcast %cst_10 : f32 to vector<2x16xf32>
    %27 = arith.mulf %26, %25 : vector<2x16xf32>
    %28 = arith.addf %24, %27 : vector<2x16xf32>
    %29 = vector.broadcast %0 : vector<2x1xf32> to vector<2x16xf32>
    %30 = arith.mulf %29, %28 : vector<2x16xf32>
    %31 = vector.extract_strided_slice %30 {offsets = [1, 0], sizes = [1, 16], strides = [1, 1]} : vector<2x16xf32> to vector<1x16xf32>
    %32 = vector.extract_strided_slice %30 {offsets = [0, 0], sizes = [1, 16], strides = [1, 1]} : vector<2x16xf32> to vector<1x16xf32>
    %33 = tpu.concatenate %31, %32 in 0 : vector<1x16xf32>, vector<1x16xf32> -> vector<2x16xf32>
    %34 = tpu.concatenate %30, %33 in 0 : vector<2x16xf32>, vector<2x16xf32> -> vector<4x16xf32>
    %c0_11 = arith.constant 0 : index
    %c0_12 = arith.constant 0 : index
    %35 = vector.load %arg5[%c0_11, %c0_12] : memref<4x16xf32, #tpu.memory_space<vmem>>, vector<4x16xf32>
    tpu.vector_store %arg5[%c0_11, %c0_12], %34 {strides = array<i32>} : memref<4x16xf32, #tpu.memory_space<vmem>>, vector<4x16xf32>,
    %c0_13 = arith.constant 0 : index
    %c0_14 = arith.constant 0 : index
    %36 = vector.load %arg3[%c0_13, %c0_14] : memref<2x16xf32, #tpu.memory_space<vmem>>, vector<2x1xf32>
    tpu.vector_store %arg3[%c0_13, %c0_14], %5 {strides = array<i32>} : memref<2x16xf32, #tpu.memory_space<vmem>>, vector<2x1xf32>,
    %37 = vector.extract_strided_slice %5 {offsets = [1, 0], sizes = [1, 1], strides = [1, 1]} : vector<2x1xf32> to vector<1x1xf32>
    %38 = vector.extract_strided_slice %5 {offsets = [0, 0], sizes = [1, 1], strides = [1, 1]} : vector<2x1xf32> to vector<1x1xf32>
    %39 = tpu.concatenate %37, %38 in 0 : vector<1x1xf32>, vector<1x1xf32> -> vector<2x1xf32>
    %c0_15 = arith.constant 0 : index
    %c0_16 = arith.constant 0 : index
    %40 = vector.load %arg5[%c0_15, %c0_16] : memref<4x16xf32, #tpu.memory_space<vmem>>, vector<4x1xf32>
    %41 = vector.extract_strided_slice %40 {offsets = [0, 0], sizes = [2, 1], strides = [1, 1]} : vector<4x1xf32> to vector<2x1xf32>
    %42 = vector.extract_strided_slice %40 {offsets = [2, 0], sizes = [2, 1], strides = [1, 1]} : vector<4x1xf32> to vector<2x1xf32>
    %43 = arith.mulf %6, %5 : vector<2x1xf32>
    %44 = arith.subf %41, %43 : vector<2x1xf32>
    %45 = arith.mulf %7, %39 : vector<2x1xf32>
    %46 = arith.subf %44, %45 : vector<2x1xf32>
    %47 = math.exp %46 : vector<2x1xf32>
    %48 = arith.mulf %5, %47 : vector<2x1xf32>
    %49 = arith.mulf %10, %39 : vector<2x1xf32>
    %50 = arith.subf %42, %49 : vector<2x1xf32>
    %51 = arith.mulf %13, %5 : vector<2x1xf32>
    %52 = arith.subf %50, %51 : vector<2x1xf32>
    %53 = math.exp %52 : vector<2x1xf32>
    %54 = arith.mulf %39, %53 : vector<2x1xf32>
    %c0_17 = arith.constant 0 : index
    %c1_18 = arith.constant 1 : index
    %55 = vector.load %arg3[%c0_17, %c1_18] : memref<2x16xf32, #tpu.memory_space<vmem>>, vector<2x1xf32>
    tpu.vector_store %arg3[%c0_17, %c1_18], %48 {strides = array<i32>} : memref<2x16xf32, #tpu.memory_space<vmem>>, vector<2x1xf32>,
    %c0_19 = arith.constant 0 : index
    %c1_20 = arith.constant 1 : index
    %56 = vector.load %arg5[%c0_19, %c1_20] : memref<4x16xf32, #tpu.memory_space<vmem>>, vector<4x1xf32>
    %57 = vector.extract_strided_slice %56 {offsets = [0, 0], sizes = [2, 1], strides = [1, 1]} : vector<4x1xf32> to vector<2x1xf32>
    %58 = vector.extract_strided_slice %56 {offsets = [2, 0], sizes = [2, 1], strides = [1, 1]} : vector<4x1xf32> to vector<2x1xf32>
    %59 = arith.mulf %6, %48 : vector<2x1xf32>
    %60 = arith.subf %57, %59 : vector<2x1xf32>
    %61 = arith.mulf %7, %54 : vector<2x1xf32>
    %62 = arith.subf %60, %61 : vector<2x1xf32>
    %63 = math.exp %62 : vector<2x1xf32>
    %64 = arith.mulf %48, %63 : vector<2x1xf32>
    %65 = arith.mulf %10, %54 : vector<2x1xf32>
    %66 = arith.subf %58, %65 : vector<2x1xf32>
    %67 = arith.mulf %13, %48 : vector<2x1xf32>
    %68 = arith.subf %66, %67 : vector<2x1xf32>
    %69 = math.exp %68 : vector<2x1xf32>
    %70 = arith.mulf %54, %69 : vector<2x1xf32>
    %c0_21 = arith.constant 0 : index
    %c2_22 = arith.constant 2 : index
    %71 = vector.load %arg3[%c0_21, %c2_22] : memref<2x16xf32, #tpu.memory_space<vmem>>, vector<2x1xf32>
    tpu.vector_store %arg3[%c0_21, %c2_22], %64 {strides = array<i32>} : memref<2x16xf32, #tpu.memory_space<vmem>>, vector<2x1xf32>,
    %c0_23 = arith.constant 0 : index
    %c2_24 = arith.constant 2 : index
    %72 = vector.load %arg5[%c0_23, %c2_24] : memref<4x16xf32, #tpu.memory_space<vmem>>, vector<4x1xf32>
    %73 = vector.extract_strided_slice %72 {offsets = [0, 0], sizes = [2, 1], strides = [1, 1]} : vector<4x1xf32> to vector<2x1xf32>
    %74 = vector.extract_strided_slice %72 {offsets = [2, 0], sizes = [2, 1], strides = [1, 1]} : vector<4x1xf32> to vector<2x1xf32>
    %75 = arith.mulf %6, %64 : vector<2x1xf32>
    %76 = arith.subf %73, %75 : vector<2x1xf32>
    %77 = arith.mulf %7, %70 : vector<2x1xf32>
    %78 = arith.subf %76, %77 : vector<2x1xf32>
    %79 = math.exp %78 : vector<2x1xf32>
    %80 = arith.mulf %64, %79 : vector<2x1xf32>
    %81 = arith.mulf %10, %70 : vector<2x1xf32>
    %82 = arith.subf %74, %81 : vector<2x1xf32>
    %83 = arith.mulf %13, %64 : vector<2x1xf32>
    %84 = arith.subf %82, %83 : vector<2x1xf32>
    %85 = math.exp %84 : vector<2x1xf32>
    %86 = arith.mulf %70, %85 : vector<2x1xf32>
    %c0_25 = arith.constant 0 : index
    %c3_26 = arith.constant 3 : index
    %87 = vector.load %arg3[%c0_25, %c3_26] : memref<2x16xf32, #tpu.memory_space<vmem>>, vector<2x1xf32>
    tpu.vector_store %arg3[%c0_25, %c3_26], %80 {strides = array<i32>} : memref<2x16xf32, #tpu.memory_space<vmem>>, vector<2x1xf32>,
    %c0_27 = arith.constant 0 : index
    %c3_28 = arith.constant 3 : index
    %88 = vector.load %arg5[%c0_27, %c3_28] : memref<4x16xf32, #tpu.memory_space<vmem>>, vector<4x1xf32>
    %89 = vector.extract_strided_slice %88 {offsets = [0, 0], sizes = [2, 1], strides = [1, 1]} : vector<4x1xf32> to vector<2x1xf32>
    %90 = vector.extract_strided_slice %88 {offsets = [2, 0], sizes = [2, 1], strides = [1, 1]} : vector<4x1xf32> to vector<2x1xf32>
    %91 = arith.mulf %6, %80 : vector<2x1xf32>
    %92 = arith.subf %89, %91 : vector<2x1xf32>
    %93 = arith.mulf %7, %86 : vector<2x1xf32>
    %94 = arith.subf %92, %93 : vector<2x1xf32>
    %95 = math.exp %94 : vector<2x1xf32>
    %96 = arith.mulf %80, %95 : vector<2x1xf32>
    %97 = arith.mulf %10, %86 : vector<2x1xf32>
    %98 = arith.subf %90, %97 : vector<2x1xf32>
    %99 = arith.mulf %13, %80 : vector<2x1xf32>
    %100 = arith.subf %98, %99 : vector<2x1xf32>
    %101 = math.exp %100 : vector<2x1xf32>
    %102 = arith.mulf %86, %101 : vector<2x1xf32>
    %c0_29 = arith.constant 0 : index
    %c4_30 = arith.constant 4 : index
    %103 = vector.load %arg3[%c0_29, %c4_30] : memref<2x16xf32, #tpu.memory_space<vmem>>, vector<2x1xf32>
    tpu.vector_store %arg3[%c0_29, %c4_30], %96 {strides = array<i32>} : memref<2x16xf32, #tpu.memory_space<vmem>>, vector<2x1xf32>,
    %c0_31 = arith.constant 0 : index
    %c4_32 = arith.constant 4 : index
    %104 = vector.load %arg5[%c0_31, %c4_32] : memref<4x16xf32, #tpu.memory_space<vmem>>, vector<4x1xf32>
    %105 = vector.extract_strided_slice %104 {offsets = [0, 0], sizes = [2, 1], strides = [1, 1]} : vector<4x1xf32> to vector<2x1xf32>
    %106 = vector.extract_strided_slice %104 {offsets = [2, 0], sizes = [2, 1], strides = [1, 1]} : vector<4x1xf32> to vector<2x1xf32>
    %107 = arith.mulf %6, %96 : vector<2x1xf32>
    %108 = arith.subf %105, %107 : vector<2x1xf32>
    %109 = arith.mulf %7, %102 : vector<2x1xf32>
    %110 = arith.subf %108, %109 : vector<2x1xf32>
    %111 = math.exp %110 : vector<2x1xf32>
    %112 = arith.mulf %96, %111 : vector<2x1xf32>
    %113 = arith.mulf %10, %102 : vector<2x1xf32>
    %114 = arith.subf %106, %113 : vector<2x1xf32>
    %115 = arith.mulf %13, %96 : vector<2x1xf32>
    %116 = arith.subf %114, %115 : vector<2x1xf32>
    %117 = math.exp %116 : vector<2x1xf32>
    %118 = arith.mulf %102, %117 : vector<2x1xf32>
    %c0_33 = arith.constant 0 : index
    %c5_34 = arith.constant 5 : index
    %119 = vector.load %arg3[%c0_33, %c5_34] : memref<2x16xf32, #tpu.memory_space<vmem>>, vector<2x1xf32>
    tpu.vector_store %arg3[%c0_33, %c5_34], %112 {strides = array<i32>} : memref<2x16xf32, #tpu.memory_space<vmem>>, vector<2x1xf32>,
    %c0_35 = arith.constant 0 : index
    %c5_36 = arith.constant 5 : index
    %120 = vector.load %arg5[%c0_35, %c5_36] : memref<4x16xf32, #tpu.memory_space<vmem>>, vector<4x1xf32>
    %121 = vector.extract_strided_slice %120 {offsets = [0, 0], sizes = [2, 1], strides = [1, 1]} : vector<4x1xf32> to vector<2x1xf32>
    %122 = vector.extract_strided_slice %120 {offsets = [2, 0], sizes = [2, 1], strides = [1, 1]} : vector<4x1xf32> to vector<2x1xf32>
    %123 = arith.mulf %6, %112 : vector<2x1xf32>
    %124 = arith.subf %121, %123 : vector<2x1xf32>
    %125 = arith.mulf %7, %118 : vector<2x1xf32>
    %126 = arith.subf %124, %125 : vector<2x1xf32>
    %127 = math.exp %126 : vector<2x1xf32>
    %128 = arith.mulf %112, %127 : vector<2x1xf32>
    %129 = arith.mulf %10, %118 : vector<2x1xf32>
    %130 = arith.subf %122, %129 : vector<2x1xf32>
    %131 = arith.mulf %13, %112 : vector<2x1xf32>
    %132 = arith.subf %130, %131 : vector<2x1xf32>
    %133 = math.exp %132 : vector<2x1xf32>
    %134 = arith.mulf %118, %133 : vector<2x1xf32>
    %c0_37 = arith.constant 0 : index
    %c6 = arith.constant 6 : index
    %135 = vector.load %arg3[%c0_37, %c6] : memref<2x16xf32, #tpu.memory_space<vmem>>, vector<2x1xf32>
    tpu.vector_store %arg3[%c0_37, %c6], %128 {strides = array<i32>} : memref<2x16xf32, #tpu.memory_space<vmem>>, vector<2x1xf32>,
    %c0_38 = arith.constant 0 : index
    %c6_39 = arith.constant 6 : index
    %136 = vector.load %arg5[%c0_38, %c6_39] : memref<4x16xf32, #tpu.memory_space<vmem>>, vector<4x1xf32>
    %137 = vector.extract_strided_slice %136 {offsets = [0, 0], sizes = [2, 1], strides = [1, 1]} : vector<4x1xf32> to vector<2x1xf32>
    %138 = vector.extract_strided_slice %136 {offsets = [2, 0], sizes = [2, 1], strides = [1, 1]} : vector<4x1xf32> to vector<2x1xf32>
    %139 = arith.mulf %6, %128 : vector<2x1xf32>
    %140 = arith.subf %137, %139 : vector<2x1xf32>
    %141 = arith.mulf %7, %134 : vector<2x1xf32>
    %142 = arith.subf %140, %141 : vector<2x1xf32>
    %143 = math.exp %142 : vector<2x1xf32>
    %144 = arith.mulf %128, %143 : vector<2x1xf32>
    %145 = arith.mulf %10, %134 : vector<2x1xf32>
    %146 = arith.subf %138, %145 : vector<2x1xf32>
    %147 = arith.mulf %13, %128 : vector<2x1xf32>
    %148 = arith.subf %146, %147 : vector<2x1xf32>
    %149 = math.exp %148 : vector<2x1xf32>
    %150 = arith.mulf %134, %149 : vector<2x1xf32>
    %c0_40 = arith.constant 0 : index
    %c7 = arith.constant 7 : index
    %151 = vector.load %arg3[%c0_40, %c7] : memref<2x16xf32, #tpu.memory_space<vmem>>, vector<2x1xf32>
    tpu.vector_store %arg3[%c0_40, %c7], %144 {strides = array<i32>} : memref<2x16xf32, #tpu.memory_space<vmem>>, vector<2x1xf32>,
    %c0_41 = arith.constant 0 : index
    %c7_42 = arith.constant 7 : index
    %152 = vector.load %arg5[%c0_41, %c7_42] : memref<4x16xf32, #tpu.memory_space<vmem>>, vector<4x1xf32>
    %153 = vector.extract_strided_slice %152 {offsets = [0, 0], sizes = [2, 1], strides = [1, 1]} : vector<4x1xf32> to vector<2x1xf32>
    %154 = vector.extract_strided_slice %152 {offsets = [2, 0], sizes = [2, 1], strides = [1, 1]} : vector<4x1xf32> to vector<2x1xf32>
    %155 = arith.mulf %6, %144 : vector<2x1xf32>
    %156 = arith.subf %153, %155 : vector<2x1xf32>
    %157 = arith.mulf %7, %150 : vector<2x1xf32>
    %158 = arith.subf %156, %157 : vector<2x1xf32>
    %159 = math.exp %158 : vector<2x1xf32>
    %160 = arith.mulf %144, %159 : vector<2x1xf32>
    %161 = arith.mulf %10, %150 : vector<2x1xf32>
    %162 = arith.subf %154, %161 : vector<2x1xf32>
    %163 = arith.mulf %13, %144 : vector<2x1xf32>
    %164 = arith.subf %162, %163 : vector<2x1xf32>
    %165 = math.exp %164 : vector<2x1xf32>
    %166 = arith.mulf %150, %165 : vector<2x1xf32>
    %c0_43 = arith.constant 0 : index
    %c8 = arith.constant 8 : index
    %167 = vector.load %arg3[%c0_43, %c8] : memref<2x16xf32, #tpu.memory_space<vmem>>, vector<2x1xf32>
    tpu.vector_store %arg3[%c0_43, %c8], %160 {strides = array<i32>} : memref<2x16xf32, #tpu.memory_space<vmem>>, vector<2x1xf32>,
    %c0_44 = arith.constant 0 : index
    %c8_45 = arith.constant 8 : index
    %168 = vector.load %arg5[%c0_44, %c8_45] : memref<4x16xf32, #tpu.memory_space<vmem>>, vector<4x1xf32>
    %169 = vector.extract_strided_slice %168 {offsets = [0, 0], sizes = [2, 1], strides = [1, 1]} : vector<4x1xf32> to vector<2x1xf32>
    %170 = vector.extract_strided_slice %168 {offsets = [2, 0], sizes = [2, 1], strides = [1, 1]} : vector<4x1xf32> to vector<2x1xf32>
    %171 = arith.mulf %6, %160 : vector<2x1xf32>
    %172 = arith.subf %169, %171 : vector<2x1xf32>
    %173 = arith.mulf %7, %166 : vector<2x1xf32>
    %174 = arith.subf %172, %173 : vector<2x1xf32>
    %175 = math.exp %174 : vector<2x1xf32>
    %176 = arith.mulf %160, %175 : vector<2x1xf32>
    %177 = arith.mulf %10, %166 : vector<2x1xf32>
    %178 = arith.subf %170, %177 : vector<2x1xf32>
    %179 = arith.mulf %13, %160 : vector<2x1xf32>
    %180 = arith.subf %178, %179 : vector<2x1xf32>
    %181 = math.exp %180 : vector<2x1xf32>
    %182 = arith.mulf %166, %181 : vector<2x1xf32>
    %c0_46 = arith.constant 0 : index
    %c9 = arith.constant 9 : index
    %183 = vector.load %arg3[%c0_46, %c9] : memref<2x16xf32, #tpu.memory_space<vmem>>, vector<2x1xf32>
    tpu.vector_store %arg3[%c0_46, %c9], %176 {strides = array<i32>} : memref<2x16xf32, #tpu.memory_space<vmem>>, vector<2x1xf32>,
    %c0_47 = arith.constant 0 : index
    %c9_48 = arith.constant 9 : index
    %184 = vector.load %arg5[%c0_47, %c9_48] : memref<4x16xf32, #tpu.memory_space<vmem>>, vector<4x1xf32>
    %185 = vector.extract_strided_slice %184 {offsets = [0, 0], sizes = [2, 1], strides = [1, 1]} : vector<4x1xf32> to vector<2x1xf32>
    %186 = vector.extract_strided_slice %184 {offsets = [2, 0], sizes = [2, 1], strides = [1, 1]} : vector<4x1xf32> to vector<2x1xf32>
    %187 = arith.mulf %6, %176 : vector<2x1xf32>
    %188 = arith.subf %185, %187 : vector<2x1xf32>
    %189 = arith.mulf %7, %182 : vector<2x1xf32>
    %190 = arith.subf %188, %189 : vector<2x1xf32>
    %191 = math.exp %190 : vector<2x1xf32>
    %192 = arith.mulf %176, %191 : vector<2x1xf32>
    %193 = arith.mulf %10, %182 : vector<2x1xf32>
    %194 = arith.subf %186, %193 : vector<2x1xf32>
    %195 = arith.mulf %13, %176 : vector<2x1xf32>
    %196 = arith.subf %194, %195 : vector<2x1xf32>
    %197 = math.exp %196 : vector<2x1xf32>
    %198 = arith.mulf %182, %197 : vector<2x1xf32>
    %c0_49 = arith.constant 0 : index
    %c10 = arith.constant 10 : index
    %199 = vector.load %arg3[%c0_49, %c10] : memref<2x16xf32, #tpu.memory_space<vmem>>, vector<2x1xf32>
    tpu.vector_store %arg3[%c0_49, %c10], %192 {strides = array<i32>} : memref<2x16xf32, #tpu.memory_space<vmem>>, vector<2x1xf32>,
    %c0_50 = arith.constant 0 : index
    %c10_51 = arith.constant 10 : index
    %200 = vector.load %arg5[%c0_50, %c10_51] : memref<4x16xf32, #tpu.memory_space<vmem>>, vector<4x1xf32>
    %201 = vector.extract_strided_slice %200 {offsets = [0, 0], sizes = [2, 1], strides = [1, 1]} : vector<4x1xf32> to vector<2x1xf32>
    %202 = vector.extract_strided_slice %200 {offsets = [2, 0], sizes = [2, 1], strides = [1, 1]} : vector<4x1xf32> to vector<2x1xf32>
    %203 = arith.mulf %6, %192 : vector<2x1xf32>
    %204 = arith.subf %201, %203 : vector<2x1xf32>
    %205 = arith.mulf %7, %198 : vector<2x1xf32>
    %206 = arith.subf %204, %205 : vector<2x1xf32>
    %207 = math.exp %206 : vector<2x1xf32>
    %208 = arith.mulf %192, %207 : vector<2x1xf32>
    %209 = arith.mulf %10, %198 : vector<2x1xf32>
    %210 = arith.subf %202, %209 : vector<2x1xf32>
    %211 = arith.mulf %13, %192 : vector<2x1xf32>
    %212 = arith.subf %210, %211 : vector<2x1xf32>
    %213 = math.exp %212 : vector<2x1xf32>
    %214 = arith.mulf %198, %213 : vector<2x1xf32>
    %c0_52 = arith.constant 0 : index
    %c11 = arith.constant 11 : index
    %215 = vector.load %arg3[%c0_52, %c11] : memref<2x16xf32, #tpu.memory_space<vmem>>, vector<2x1xf32>
    tpu.vector_store %arg3[%c0_52, %c11], %208 {strides = array<i32>} : memref<2x16xf32, #tpu.memory_space<vmem>>, vector<2x1xf32>,
    %c0_53 = arith.constant 0 : index
    %c11_54 = arith.constant 11 : index
    %216 = vector.load %arg5[%c0_53, %c11_54] : memref<4x16xf32, #tpu.memory_space<vmem>>, vector<4x1xf32>
    %217 = vector.extract_strided_slice %216 {offsets = [0, 0], sizes = [2, 1], strides = [1, 1]} : vector<4x1xf32> to vector<2x1xf32>
    %218 = vector.extract_strided_slice %216 {offsets = [2, 0], sizes = [2, 1], strides = [1, 1]} : vector<4x1xf32> to vector<2x1xf32>
    %219 = arith.mulf %6, %208 : vector<2x1xf32>
    %220 = arith.subf %217, %219 : vector<2x1xf32>
    %221 = arith.mulf %7, %214 : vector<2x1xf32>
    %222 = arith.subf %220, %221 : vector<2x1xf32>
    %223 = math.exp %222 : vector<2x1xf32>
    %224 = arith.mulf %208, %223 : vector<2x1xf32>
    %225 = arith.mulf %10, %214 : vector<2x1xf32>
    %226 = arith.subf %218, %225 : vector<2x1xf32>
    %227 = arith.mulf %13, %208 : vector<2x1xf32>
    %228 = arith.subf %226, %227 : vector<2x1xf32>
    %229 = math.exp %228 : vector<2x1xf32>
    %230 = arith.mulf %214, %229 : vector<2x1xf32>
    %c0_55 = arith.constant 0 : index
    %c12 = arith.constant 12 : index
    %231 = vector.load %arg3[%c0_55, %c12] : memref<2x16xf32, #tpu.memory_space<vmem>>, vector<2x1xf32>
    tpu.vector_store %arg3[%c0_55, %c12], %224 {strides = array<i32>} : memref<2x16xf32, #tpu.memory_space<vmem>>, vector<2x1xf32>,
    %c0_56 = arith.constant 0 : index
    %c12_57 = arith.constant 12 : index
    %232 = vector.load %arg5[%c0_56, %c12_57] : memref<4x16xf32, #tpu.memory_space<vmem>>, vector<4x1xf32>
    %233 = vector.extract_strided_slice %232 {offsets = [0, 0], sizes = [2, 1], strides = [1, 1]} : vector<4x1xf32> to vector<2x1xf32>
    %234 = vector.extract_strided_slice %232 {offsets = [2, 0], sizes = [2, 1], strides = [1, 1]} : vector<4x1xf32> to vector<2x1xf32>
    %235 = arith.mulf %6, %224 : vector<2x1xf32>
    %236 = arith.subf %233, %235 : vector<2x1xf32>
    %237 = arith.mulf %7, %230 : vector<2x1xf32>
    %238 = arith.subf %236, %237 : vector<2x1xf32>
    %239 = math.exp %238 : vector<2x1xf32>
    %240 = arith.mulf %224, %239 : vector<2x1xf32>
    %241 = arith.mulf %10, %230 : vector<2x1xf32>
    %242 = arith.subf %234, %241 : vector<2x1xf32>
    %243 = arith.mulf %13, %224 : vector<2x1xf32>
    %244 = arith.subf %242, %243 : vector<2x1xf32>
    %245 = math.exp %244 : vector<2x1xf32>
    %246 = arith.mulf %230, %245 : vector<2x1xf32>
    %c0_58 = arith.constant 0 : index
    %c13 = arith.constant 13 : index
    %247 = vector.load %arg3[%c0_58, %c13] : memref<2x16xf32, #tpu.memory_space<vmem>>, vector<2x1xf32>
    tpu.vector_store %arg3[%c0_58, %c13], %240 {strides = array<i32>} : memref<2x16xf32, #tpu.memory_space<vmem>>, vector<2x1xf32>,
    %c0_59 = arith.constant 0 : index
    %c13_60 = arith.constant 13 : index
    %248 = vector.load %arg5[%c0_59, %c13_60] : memref<4x16xf32, #tpu.memory_space<vmem>>, vector<4x1xf32>
    %249 = vector.extract_strided_slice %248 {offsets = [0, 0], sizes = [2, 1], strides = [1, 1]} : vector<4x1xf32> to vector<2x1xf32>
    %250 = vector.extract_strided_slice %248 {offsets = [2, 0], sizes = [2, 1], strides = [1, 1]} : vector<4x1xf32> to vector<2x1xf32>
    %251 = arith.mulf %6, %240 : vector<2x1xf32>
    %252 = arith.subf %249, %251 : vector<2x1xf32>
    %253 = arith.mulf %7, %246 : vector<2x1xf32>
    %254 = arith.subf %252, %253 : vector<2x1xf32>
    %255 = math.exp %254 : vector<2x1xf32>
    %256 = arith.mulf %240, %255 : vector<2x1xf32>
    %257 = arith.mulf %10, %246 : vector<2x1xf32>
    %258 = arith.subf %250, %257 : vector<2x1xf32>
    %259 = arith.mulf %13, %240 : vector<2x1xf32>
    %260 = arith.subf %258, %259 : vector<2x1xf32>
    %261 = math.exp %260 : vector<2x1xf32>
    %262 = arith.mulf %246, %261 : vector<2x1xf32>
    %c0_61 = arith.constant 0 : index
    %c14 = arith.constant 14 : index
    %263 = vector.load %arg3[%c0_61, %c14] : memref<2x16xf32, #tpu.memory_space<vmem>>, vector<2x1xf32>
    tpu.vector_store %arg3[%c0_61, %c14], %256 {strides = array<i32>} : memref<2x16xf32, #tpu.memory_space<vmem>>, vector<2x1xf32>,
    %c0_62 = arith.constant 0 : index
    %c14_63 = arith.constant 14 : index
    %264 = vector.load %arg5[%c0_62, %c14_63] : memref<4x16xf32, #tpu.memory_space<vmem>>, vector<4x1xf32>
    %265 = vector.extract_strided_slice %264 {offsets = [0, 0], sizes = [2, 1], strides = [1, 1]} : vector<4x1xf32> to vector<2x1xf32>
    %266 = arith.mulf %6, %256 : vector<2x1xf32>
    %267 = arith.subf %265, %266 : vector<2x1xf32>
    %268 = arith.mulf %7, %262 : vector<2x1xf32>
    %269 = arith.subf %267, %268 : vector<2x1xf32>
    %270 = math.exp %269 : vector<2x1xf32>
    %271 = arith.mulf %256, %270 : vector<2x1xf32>
    %c0_64 = arith.constant 0 : index
    %c15 = arith.constant 15 : index
    %272 = vector.load %arg3[%c0_64, %c15] : memref<2x16xf32, #tpu.memory_space<vmem>>, vector<2x1xf32>
    tpu.vector_store %arg3[%c0_64, %c15], %271 {strides = array<i32>} : memref<2x16xf32, #tpu.memory_space<vmem>>, vector<2x1xf32>,
    %c0_65 = arith.constant 0 : index
    %c0_66 = arith.constant 0 : index
    %273 = vector.load %arg3[%c0_65, %c0_66] : memref<2x16xf32, #tpu.memory_space<vmem>>, vector<2x16xf32>
    %274 = vector.extract_strided_slice %273 {offsets = [1, 0], sizes = [1, 16], strides = [1, 1]} : vector<2x16xf32> to vector<1x16xf32>
    %275 = vector.extract_strided_slice %273 {offsets = [0, 0], sizes = [1, 16], strides = [1, 1]} : vector<2x16xf32> to vector<1x16xf32>
    %276 = tpu.concatenate %274, %275 in 0 : vector<1x16xf32>, vector<1x16xf32> -> vector<2x16xf32>
    %277 = vector.broadcast %6 : vector<2x1xf32> to vector<2x16xf32>
    %278 = arith.mulf %277, %273 : vector<2x16xf32>
    %279 = arith.subf %30, %278 : vector<2x16xf32>
    %280 = vector.broadcast %7 : vector<2x1xf32> to vector<2x16xf32>
    %281 = arith.mulf %280, %276 : vector<2x16xf32>
    %282 = arith.subf %279, %281 : vector<2x16xf32>
    %283 = math.exp %282 : vector<2x16xf32>
    %284 = vector.broadcast %6 : vector<2x1xf32> to vector<2x16xf32>
    %285 = arith.mulf %284, %273 : vector<2x16xf32>
    %cst_67 = arith.constant 1.000000e+00 : f32
    %286 = vector.broadcast %cst_67 : f32 to vector<2x16xf32>
    %287 = arith.subf %286, %285 : vector<2x16xf32>
    %288 = arith.mulf %283, %287 : vector<2x16xf32>
    %289 = vector.broadcast %7 : vector<2x1xf32> to vector<2x16xf32>
    %290 = arith.mulf %289, %273 : vector<2x16xf32>
    %cst_68 = arith.constant 0.000000e+00 : f32
    %291 = vector.broadcast %cst_68 : f32 to vector<2x16xf32>
    %292 = arith.subf %291, %290 : vector<2x16xf32>
    %293 = arith.mulf %292, %283 : vector<2x16xf32>
    %294 = vector.extract_strided_slice %288 {offsets = [0, 0], sizes = [1, 16], strides = [1, 1]} : vector<2x16xf32> to vector<1x16xf32>
    %295 = vector.extract_strided_slice %293 {offsets = [0, 0], sizes = [1, 16], strides = [1, 1]} : vector<2x16xf32> to vector<1x16xf32>
    %296 = vector.extract_strided_slice %293 {offsets = [1, 0], sizes = [1, 16], strides = [1, 1]} : vector<2x16xf32> to vector<1x16xf32>
    %297 = vector.extract_strided_slice %288 {offsets = [1, 0], sizes = [1, 16], strides = [1, 1]} : vector<2x16xf32> to vector<1x16xf32>
    %298 = tpu.concatenate %294, %295, %296, %297 in 0 : vector<1x16xf32>, vector<1x16xf32>, vector<1x16xf32>, vector<1x16xf32> -> vector<4x16xf32>
    %c0_69 = arith.constant 0 : index
    %c0_70 = arith.constant 0 : index
    %299 = vector.load %arg4[%c0_69, %c0_70] : memref<4x16xf32, #tpu.memory_space<vmem>>, vector<4x16xf32>
    tpu.vector_store %arg4[%c0_69, %c0_70], %298 {strides = array<i32>} : memref<4x16xf32, #tpu.memory_space<vmem>>, vector<4x16xf32>,
    return
  }
}

</mosaic_0001>

<bundles_post_ra>
// kernel: ricker_forward_pallas.1
= control target key start
LH: loop header
LB: loop body
LE: loop exit
PB: predicated region body
PF: predicated region fallthrough
CT: control target
= control target key end

     0   :  { %10 = vsyncpa [#allocation4], 0  ;;  %v1082_v1 = vmov 3   ;;  %v1083_v2 = vmov 0   ;;  %s1444_s0 = inlined_call_operand.vmem [shape: f32[1,16], index: 0, kind: input, shape index: {}]   ;;  %s1445_s1 = inlined_call_operand.vmem [shape: f32[2,16], index: 1, kind: input, shape index: {}]   ;;  %s1446_s2 = inlined_call_operand.vmem [shape: f32[2,8], index: 2, kind: input, shape index: {}]   ;;  %s1447_s3 = inlined_call_operand.hbm [shape: f32[2,16], index: 3, kind: output, shape index: {0}]   ;;  %s1448_s4 = inlined_call_operand.hbm [shape: f32[4,16], index: 4, kind: output, shape index: {1}]  }
   0x1   :  { %v1138_v0 = vld [vmem:[%s1446_s2] sm:$0x3]  ;;  %970 = vset.pattern.permute.xlu0 %v1082_v1  ;;  %972 = vset.pattern.permute.xlu1 %v1083_v2 }
   0x2   :  { %43 = vperm.xlu0 %970, %v1138_v0   ;;  %71 = vperm.xlu1 %972, %v1138_v0  }
   0x3   :  { %11 = vsyncpa [#allocation6], 0  ;;  %v93_v3 = vrot.slane %v1138_v0, 1  ;;  %v95_v4 = vrot.slane %v1138_v0, 7  ;;  %vm33_vm0 = vcmask 1040384   ;;  %v1084_v5 = vmov 4  }
   0x4   :  { %s1085_s17 = smov 127   ;;  %s1086_s2 = smov 126   ;;  %v47_v7 = vlaneseq  ;;  %v41_v10 = vld [vmem:[%s1444_s0] sm:$0x1]  ;;  %vm91_vm1 = vcmask 1024   ;;  %vm84_vm2 = vcmask 1041408  }
   0x5   :  { %v1148_v6 = vsel %vm33_vm0, %v93_v3, %v95_v4  ;;  %s1087_s18 = smov 123   ;;  %v54_v12 = vmul.f32 %v41_v10, %v41_v10  ;;  %v67_v17 = vld [vmem:[%s1445_s1] sm:$0x3]  ;;  %vm86_vm3 = vcmask 125952   ;;  %s1088_s0 = smov 5   ;;  %vm136_vm4 = vcmask 9224  }
   0x6   :  { %971 = vset.pattern.permute.xlu0 %v1084_v5  ;;  %20 = vrot.lane.b32.xlu1 %v1138_v0, %s1085_s17  ;;  %v48_v8 = vshrl.u32 %v47_v7, 7  ;;  %v68_v22 = vmul.f32 0.08, %v67_v17  ;;  %s1089_s1 = smov 1   ;;  %s1090_s23 = smov 4   ;;  %vm191_vm5 = vcmask 17424  }
   0x7   :  { %56 = vperm.xlu0 %971, %v1138_v0   ;;  %s1091_s24 = smov 2   ;;  %s1092_s25 = smov 3   ;;  %vm246_vm6 = vcmask 25624   ;;  %vm301_vm7 = vcmask 33824   ;;  %vm352_vm8 = vcmask 42024   ;;  %vm402_vm9 = vcmask 50224  }
   0x8   :  { %v49_v9 = vsub.s32 0, %v48_v8  ;;  %s1093_s26 = smov 6   ;;  %s1094_s27 = smov 7   ;;  %vm457_vm10 = vcmask 58424   ;;  %vm512_vm11 = vcmask 66624   ;;  %vm567_vm12 = vcmask 74824  }
   0x9   :  { %s1095_s28 = smov 8   ;;  %s1096_s29 = smov 125   ;;  %vm622_vm13 = vcmask 83024   ;;  %vm677_vm14 = vcmask 91224   ;;  %vm732_vm15 = vcmask 99424  }
   0xa   :  { %24 = vrot.lane.b32.xlu1 %v1138_v0, %s1086_s2  ;;  %v50_v11 = vrot.slane %v41_v10, %v49_v9  ;;  %v63_v16 = vrot.slane %v54_v12, %v49_v9  ;;  %s1097_s30 = smov 9   ;;  %s1098_s5 = smov 124  }
   0xb   :  { %102 = vrot.lane.b32.xlu0 %v1148_v6, %s1087_s18  ;;  %s1099_s6 = smov 10   ;;  %s1100_s7 = smov 11  }
   0xc   :  { %973 = vset.pattern.permute.xlu0 %v1083_v2  ;;  %s1101_s8 = smov 122   ;;  %s1102_s9 = smov 12  }
   0xd   :  { %s1103_s10 = smov 121   ;;  %s1104_s11 = smov 13  }
   0xe   :  { %88 = vrot.lane.b32.xlu1 %v1138_v0, %s1087_s18  ;;  %s1105_s12 = smov 120   ;;  %s1106_s13 = smov 14  }
   0xf   :  { %s1107_s14 = smov 119   ;;  %s1108_s15 = smov [#allocation3]  }
  0x10   :  { %s920_s16 = sshll.u32 %s1108_s15, 4  ;;  %s921_s16 = int_to_ptr.vmem [resolvable:$true] %s920_s16 }
  0x11   :  { %p1039_p1 = scmp.lt.s32.totalorder %s921_s16, %s921_s16 }
  0x81   :  { %v44_v13 = vpop.permute.xlu0 %43  ;;  %v72_v14 = vpop.permute.xlu1 %71 }
  0x82   :  { %v52_v15 = vmul.f32 %v50_v11, %v44_v13 }
  0x84   :  { %v53_v20 = vadd.f32 1.0, %v52_v15 }
  0x85   :  { %v21_v18 = vpop.permute.xlu1 %20 }
  0x86   :  { %v57_v19 = vpop.permute.xlu0 %56  ;;  %v1163_v26 = vmul.f32 %v21_v18, %v1138_v0 }
  0x87   :  { %v65_v21 = vmul.f32 %v63_v16, %v57_v19 }
  0x88   :  { %v29_v34 = vrot.slane %v1163_v26, 1  ;;  %v31_v35 = vrot.slane %v1163_v26, 7 }
  0x89   :  { %v66_v23 = vadd.f32 %v65_v21, %v53_v20  ;;  %v25_v24 = vpop.permute.xlu1 %24 }
  0x8a   :  { %v1166_v27 = vmul.f32 %v25_v24, %v1138_v0  ;;  %v1183_v40 = vsel %vm33_vm0, %v29_v34, %v31_v35  ;;  %v103_v41 = vpop.permute.xlu0 %102 }
  0x8b   :  { %v69_v25 = vadd.f32 %v68_v22, %v66_v23  ;;  %v114_v43 = vmul.f32 %v103_v41, %v1183_v40 }
  0x8c   :  { %v36_v32 = vrot.slane %v1166_v27, 1  ;;  %v38_v33 = vrot.slane %v1166_v27, 7  ;;  %v105_v49 = vmul.f32 %v103_v41, %v1166_v27 }
  0x8d   :  { %v1168_v28 = vmul.f32 %v72_v14, %v69_v25  ;;  %v89_v29 = vpop.permute.xlu1 %88  ;;  %v116_v46 = vrot.slane %v114_v43, 6 }
  0x8e   :  { %92 = vst.msk [vmem:[#allocation3] sm:$0x3] %vm91_vm1, %v89_v29  ;;  %v1180_v39 = vsel %vm33_vm0, %v36_v32, %v38_v33  ;;  %v99_v44 = vmul.f32 %v89_v29, %v1163_v26  ;;  %vm787_vm1 = vcmask 107624  }
  0x8f   :  { %v76_v30 = vrot.slane %v1168_v28, 1  ;;  %v78_v31 = vrot.slane %v1168_v28, 7  ;;  %v119_v42 = vmul.f32 %v89_v29, %v1180_v39 }
  0x91   :  { %v80_v36 = vsel %vm33_vm0, %v76_v30, %v78_v31  ;;  %v121_v45 = vrot.slane %v119_v42, 6 }
  0x92   :  { %v82_v37 = vrot.slane %v80_v36, 6 }
  0x94   :  { %v85_v38 = vsel %vm84_vm2, %v1168_v28, %v82_v37 }
  0x95   :  { %87 = vst.msk [vmem:[#allocation2] sm:$0xf] %vm86_vm3, %v85_v38 }
  0x9c   :  { %v98_v47 = vld [vmem:[#allocation2] sm:$0xf] }
  0x9d   :  { %v100_v48 = vsub.f32 %v98_v47, %v99_v44  ;;  %v118_v50 = vsub.f32 %v98_v47, %v116_v46  ;;  %v138_v7 = vld [vmem:[#allocation2] sm:$0xf] }
  0x9e   :  { %v193_v35 = vld [vmem:[#allocation2] sm:$0xf] }
  0x9f   :  { %v106_v51 = vsub.f32 %v100_v48, %v105_v49  ;;  %v123_v52 = vsub.f32 %v118_v50, %v121_v45 }
  0xa1   :  { %v107_v53 = vmul.f32 1.442695, %v106_v51  ;;  %v124_v54 = vmul.f32 1.442695, %v123_v52 }
  0xa3   :  { %974 = vpow2.f32 %v107_v53 }
  0xa4   :  { %976 = vpow2.f32 %v124_v54 }
  0xad   :  { %v975_v55 = vpop.eup %974 }
  0xae   :  { %v977_v56 = vpop.eup %976  ;;  %110 = vrot.lane.b32.xlu1 %v975_v55, %s1088_s0 }
  0xaf   :  { %v127_v57 = vrot.slane %v977_v56, 2 }
  0xb1   :  { %128 = vrot.lane.b32.xlu0 %v127_v57, %s1088_s0 }
 0x120   :  { %v111_v58 = vpop.permute.xlu1 %110 }
 0x121   :  { %v1193_v59 = vmul.f32 %v111_v58, %v1138_v0 }
 0x123   :  { %v129_v60 = vpop.permute.xlu0 %128  ;;  %139 = vrot.lane.b32.xlu1 %v1193_v59, %s1087_s18 }
 0x124   :  { %v131_v61 = vmul.f32 %v129_v60, %v1148_v6 }
 0x126   :  { %149 = vrot.lane.b32.xlu0 %v131_v61, %s1087_s18 }
 0x195   :  { %v140_v62 = vpop.permute.xlu1 %139 }
 0x196   :  { %v172_v63 = vmul.f32 %v140_v62, %v1180_v39  ;;  %v142_v5 = vmul.f32 %v140_v62, %v1163_v26 }
 0x198   :  { %v150_v1 = vpop.permute.xlu0 %149  ;;  %v174_v2 = vrot.slane %v172_v63, 6 }
 0x199   :  { %v165_v3 = vmul.f32 %v150_v1, %v1183_v40  ;;  %v152_v4 = vmul.f32 %v150_v1, %v1166_v27  ;;  %v248_v1 = vld [vmem:[#allocation2] sm:$0xf] }
 0x19a   :  { %175 = vrot.lane.b32.xlu1 %v174_v2, %s1089_s1 }
 0x19b   :  { %v167_v0 = vrot.slane %v165_v3, 6 }
 0x19d   :  { %168 = vrot.lane.b32.xlu0 %v167_v0, %s1089_s1 }
 0x19e   :  { %154 = vrot.lane.b32.xlu1 %v152_v4, %s1089_s1 }
 0x1a1   :  { %144 = vrot.lane.b32.xlu0 %v142_v5, %s1089_s1 }
 0x20c   :  { %v176_v6 = vpop.permute.xlu1 %175 }
 0x20f   :  { %v169_v8 = vpop.permute.xlu0 %168 }
 0x210   :  { %v171_v9 = vsub.f32 %v138_v7, %v169_v8  ;;  %v155_v14 = vpop.permute.xlu1 %154 }
 0x212   :  { %v178_v10 = vsub.f32 %v171_v9, %v176_v6 }
 0x213   :  { %v145_v11 = vpop.permute.xlu0 %144 }
 0x214   :  { %v179_v12 = vmul.f32 1.442695, %v178_v10  ;;  %v147_v13 = vsub.f32 %v138_v7, %v145_v11 }
 0x216   :  { %978 = vpow2.f32 %v179_v12  ;;  %v157_v15 = vsub.f32 %v147_v13, %v155_v14 }
 0x218   :  { %v158_v16 = vmul.f32 1.442695, %v157_v15 }
 0x21a   :  { %980 = vpow2.f32 %v158_v16 }
 0x220   :  { %v979_v17 = vpop.eup %978 }
 0x221   :  { %v182_v18 = vrot.slane %v979_v17, 2 }
 0x223   :  { %183 = vrot.lane.b32.xlu0 %v182_v18, %s1090_s23 }
 0x224   :  { %v981_v19 = vpop.eup %980 }
 0x225   :  { %161 = vrot.lane.b32.xlu1 %v981_v19, %s1090_s23 }
 0x295   :  { %v184_v20 = vpop.permute.xlu0 %183 }
 0x296   :  { %v186_v21 = vmul.f32 %v184_v20, %v131_v61 }
 0x297   :  { %v162_v22 = vpop.permute.xlu1 %161 }
 0x298   :  { %v1210_v23 = vmul.f32 %v162_v22, %v1193_v59  ;;  %204 = vrot.lane.b32.xlu0 %v186_v21, %s1087_s18 }
 0x29a   :  { %194 = vrot.lane.b32.xlu1 %v1210_v23, %s1087_s18 }
 0x30a   :  { %v205_v24 = vpop.permute.xlu0 %204 }
 0x30b   :  { %v220_v25 = vmul.f32 %v205_v24, %v1183_v40  ;;  %v207_v34 = vmul.f32 %v205_v24, %v1166_v27 }
 0x30c   :  { %v195_v29 = vpop.permute.xlu1 %194 }
 0x30d   :  { %v227_v30 = vmul.f32 %v195_v29, %v1180_v39  ;;  %v222_v31 = vrot.slane %v220_v25, 6  ;;  %v197_v33 = vmul.f32 %v195_v29, %v1163_v26 }
 0x30f   :  { %223 = vrot.lane.b32.xlu0 %v222_v31, %s1091_s24  ;;  %v229_v32 = vrot.slane %v227_v30, 6  ;;  %v303_v30 = vld [vmem:[#allocation2] sm:$0xf] }
 0x311   :  { %230 = vrot.lane.b32.xlu1 %v229_v32, %s1091_s24 }
 0x313   :  { %199 = vrot.lane.b32.xlu0 %v197_v33, %s1091_s24 }
 0x315   :  { %209 = vrot.lane.b32.xlu1 %v207_v34, %s1091_s24 }
 0x381   :  { %v224_v36 = vpop.permute.xlu0 %223 }
 0x382   :  { %v226_v37 = vsub.f32 %v193_v35, %v224_v36 }
 0x383   :  { %v231_v38 = vpop.permute.xlu1 %230 }
 0x384   :  { %v233_v41 = vsub.f32 %v226_v37, %v231_v38 }
 0x385   :  { %v200_v42 = vpop.permute.xlu0 %199 }
 0x386   :  { %v234_v43 = vmul.f32 1.442695, %v233_v41  ;;  %v202_v44 = vsub.f32 %v193_v35, %v200_v42 }
 0x387   :  { %v210_v45 = vpop.permute.xlu1 %209 }
 0x388   :  { %982 = vpow2.f32 %v234_v43  ;;  %v212_v46 = vsub.f32 %v202_v44, %v210_v45 }
 0x38a   :  { %v213_v47 = vmul.f32 1.442695, %v212_v46 }
 0x38c   :  { %984 = vpow2.f32 %v213_v47 }
 0x392   :  { %v983_v48 = vpop.eup %982 }
 0x393   :  { %v237_v49 = vrot.slane %v983_v48, 2 }
 0x395   :  { %238 = vrot.lane.b32.xlu0 %v237_v49, %s1092_s25 }
 0x396   :  { %v985_v50 = vpop.eup %984 }
 0x397   :  { %216 = vrot.lane.b32.xlu1 %v985_v50, %s1092_s25 }
 0x407   :  { %v239_v51 = vpop.permute.xlu0 %238 }
 0x408   :  { %v241_v52 = vmul.f32 %v239_v51, %v186_v21 }
 0x409   :  { %v217_v53 = vpop.permute.xlu1 %216 }
 0x40a   :  { %v1226_v54 = vmul.f32 %v217_v53, %v1210_v23  ;;  %259 = vrot.lane.b32.xlu0 %v241_v52, %s1087_s18 }
 0x40c   :  { %249 = vrot.lane.b32.xlu1 %v1226_v54, %s1087_s18 }
 0x47c   :  { %v260_v55 = vpop.permute.xlu0 %259 }
 0x47d   :  { %v275_v56 = vmul.f32 %v260_v55, %v1183_v40  ;;  %v262_v63 = vmul.f32 %v260_v55, %v1166_v27 }
 0x47e   :  { %v250_v57 = vpop.permute.xlu1 %249 }
 0x47f   :  { %v282_v58 = vmul.f32 %v250_v57, %v1180_v39  ;;  %v277_v60 = vrot.slane %v275_v56, 6  ;;  %v252_v62 = vmul.f32 %v250_v57, %v1163_v26 }
 0x481   :  { %278 = vrot.lane.b32.xlu0 %v277_v60, %s1092_s25  ;;  %v284_v61 = vrot.slane %v282_v58, 6  ;;  %v354_v60 = vld [vmem:[#allocation2] sm:$0xf] }
 0x483   :  { %285 = vrot.lane.b32.xlu1 %v284_v61, %s1092_s25 }
 0x485   :  { %254 = vrot.lane.b32.xlu0 %v252_v62, %s1092_s25 }
 0x487   :  { %264 = vrot.lane.b32.xlu1 %v262_v63, %s1092_s25 }
 0x4f3   :  { %v279_v2 = vpop.permute.xlu0 %278 }
 0x4f4   :  { %v281_v3 = vsub.f32 %v248_v1, %v279_v2 }
 0x4f5   :  { %v286_v0 = vpop.permute.xlu1 %285 }
 0x4f6   :  { %v288_v4 = vsub.f32 %v281_v3, %v286_v0 }
 0x4f7   :  { %v255_v5 = vpop.permute.xlu0 %254 }
 0x4f8   :  { %v289_v6 = vmul.f32 1.442695, %v288_v4  ;;  %v257_v7 = vsub.f32 %v248_v1, %v255_v5 }
 0x4f9   :  { %v265_v8 = vpop.permute.xlu1 %264 }
 0x4fa   :  { %986 = vpow2.f32 %v289_v6  ;;  %v267_v9 = vsub.f32 %v257_v7, %v265_v8 }
 0x4fc   :  { %v268_v10 = vmul.f32 1.442695, %v267_v9 }
 0x4fe   :  { %988 = vpow2.f32 %v268_v10 }
 0x504   :  { %v987_v11 = vpop.eup %986 }
 0x505   :  { %v292_v12 = vrot.slane %v987_v11, 2 }
 0x507   :  { %293 = vrot.lane.b32.xlu0 %v292_v12, %s1091_s24 }
 0x508   :  { %v989_v13 = vpop.eup %988 }
 0x509   :  { %271 = vrot.lane.b32.xlu1 %v989_v13, %s1091_s24 }
 0x579   :  { %v294_v14 = vpop.permute.xlu0 %293 }
 0x57a   :  { %v296_v15 = vmul.f32 %v294_v14, %v241_v52 }
 0x57b   :  { %v272_v16 = vpop.permute.xlu1 %271 }
 0x57c   :  { %v1242_v17 = vmul.f32 %v272_v16, %v1226_v54  ;;  %314 = vrot.lane.b32.xlu0 %v296_v15, %s1087_s18 }
 0x57e   :  { %304 = vrot.lane.b32.xlu1 %v1242_v17, %s1087_s18 }
 0x5ee   :  { %v315_v18 = vpop.permute.xlu0 %314 }
 0x5ef   :  { %v330_v19 = vmul.f32 %v315_v18, %v1183_v40  ;;  %v317_v29 = vmul.f32 %v315_v18, %v1166_v27 }
 0x5f0   :  { %v305_v20 = vpop.permute.xlu1 %304 }
 0x5f1   :  { %v337_v21 = vmul.f32 %v305_v20, %v1180_v39  ;;  %v332_v22 = vrot.slane %v330_v19, 6  ;;  %v307_v25 = vmul.f32 %v305_v20, %v1163_v26 }
 0x5f3   :  { %v339_v24 = vrot.slane %v337_v21, 6  ;;  %333 = vrot.lane.b32.xlu0 %v332_v22, %s1090_s23  ;;  %v404_v21 = vld [vmem:[#allocation2] sm:$0xf] }
 0x5f5   :  { %340 = vrot.lane.b32.xlu1 %v339_v24, %s1090_s23 }
 0x5f7   :  { %309 = vrot.lane.b32.xlu0 %v307_v25, %s1090_s23 }
 0x5f9   :  { %319 = vrot.lane.b32.xlu1 %v317_v29, %s1090_s23 }
 0x665   :  { %v334_v31 = vpop.permute.xlu0 %333 }
 0x666   :  { %v336_v32 = vsub.f32 %v303_v30, %v334_v31 }
 0x667   :  { %v341_v33 = vpop.permute.xlu1 %340 }
 0x668   :  { %v343_v34 = vsub.f32 %v336_v32, %v341_v33 }
 0x669   :  { %v310_v35 = vpop.permute.xlu0 %309 }
 0x66a   :  { %v344_v36 = vmul.f32 1.442695, %v343_v34  ;;  %v312_v37 = vsub.f32 %v303_v30, %v310_v35 }
 0x66b   :  { %v320_v38 = vpop.permute.xlu1 %319 }
 0x66c   :  { %990 = vpow2.f32 %v344_v36  ;;  %v322_v41 = vsub.f32 %v312_v37, %v320_v38 }
 0x66e   :  { %v323_v42 = vmul.f32 1.442695, %v322_v41 }
 0x670   :  { %992 = vpow2.f32 %v323_v42 }
 0x676   :  { %v991_v43 = vpop.eup %990 }
 0x677   :  { %v347_v44 = vrot.slane %v991_v43, 2 }
 0x679   :  { %348 = vrot.lane.b32.xlu0 %v347_v44, %s1089_s1 }
 0x67a   :  { %v993_v45 = vpop.eup %992 }
 0x67b   :  { %326 = vrot.lane.b32.xlu1 %v993_v45, %s1089_s1 }
 0x6eb   :  { %v349_v46 = vpop.permute.xlu0 %348 }
 0x6ec   :  { %v351_v47 = vmul.f32 %v349_v46, %v296_v15 }
 0x6ed   :  { %v327_v48 = vpop.permute.xlu1 %326 }
 0x6ee   :  { %v1258_v49 = vmul.f32 %v327_v48, %v1242_v17  ;;  %366 = vrot.lane.b32.xlu0 %v351_v47, %s1087_s18 }
 0x6f0   :  { %356 = vrot.lane.b32.xlu1 %v1258_v49, %s1087_s18 }
 0x760   :  { %v367_v50 = vpop.permute.xlu0 %366 }
 0x761   :  { %v378_v51 = vmul.f32 %v367_v50, %v1183_v40  ;;  %v369_v58 = vmul.f32 %v367_v50, %v1166_v27 }
 0x762   :  { %v357_v52 = vpop.permute.xlu1 %356 }
 0x763   :  { %v380_v53 = vrot.slane %v378_v51, 6  ;;  %v385_v55 = vmul.f32 %v357_v52, %v1180_v39  ;;  %v359_v57 = vmul.f32 %v357_v52, %v1163_v26 }
 0x765   :  { %v387_v56 = vrot.slane %v385_v55, 6  ;;  %381 = vrot.lane.b32.xlu0 %v380_v53, %s1088_s0  ;;  %v459_v55 = vld [vmem:[#allocation2] sm:$0xf] }
 0x767   :  { %388 = vrot.lane.b32.xlu1 %v387_v56, %s1088_s0 }
 0x769   :  { %361 = vrot.lane.b32.xlu0 %v359_v57, %s1088_s0 }
 0x76b   :  { %371 = vrot.lane.b32.xlu1 %v369_v58, %s1088_s0 }
 0x7d7   :  { %v382_v61 = vpop.permute.xlu0 %381 }
 0x7d8   :  { %v384_v62 = vsub.f32 %v354_v60, %v382_v61 }
 0x7d9   :  { %v389_v63 = vpop.permute.xlu1 %388 }
 0x7da   :  { %v391_v1 = vsub.f32 %v384_v62, %v389_v63 }
 0x7db   :  { %v362_v2 = vpop.permute.xlu0 %361 }
 0x7dc   :  { %v392_v3 = vmul.f32 1.442695, %v391_v1  ;;  %v364_v0 = vsub.f32 %v354_v60, %v362_v2 }
 0x7dd   :  { %v372_v4 = vpop.permute.xlu1 %371 }
 0x7de   :  { %994 = vpow2.f32 %v392_v3  ;;  %v374_v5 = vsub.f32 %v364_v0, %v372_v4 }
 0x7e0   :  { %v375_v6 = vmul.f32 1.442695, %v374_v5 }
 0x7e2   :  { %996 = vpow2.f32 %v375_v6 }
 0x7e8   :  { %v995_v7 = vpop.eup %994 }
 0x7e9   :  { %v395_v8 = vrot.slane %v995_v7, 2 }
 0x7eb   :  { %v397_v9 = vmul.f32 %v395_v8, %v351_v47 }
 0x7ec   :  { %v997_v10 = vpop.eup %996 }
 0x7ed   :  { %415 = vrot.lane.b32.xlu0 %v397_v9, %s1087_s18  ;;  %v1273_v11 = vmul.f32 %v997_v10, %v1258_v49 }
 0x7ef   :  { %405 = vrot.lane.b32.xlu1 %v1273_v11, %s1087_s18 }
 0x85f   :  { %v416_v12 = vpop.permute.xlu0 %415 }
 0x860   :  { %v431_v13 = vmul.f32 %v416_v12, %v1183_v40  ;;  %v418_v20 = vmul.f32 %v416_v12, %v1166_v27 }
 0x861   :  { %v406_v14 = vpop.permute.xlu1 %405 }
 0x862   :  { %v433_v15 = vrot.slane %v431_v13, 6  ;;  %v438_v16 = vmul.f32 %v406_v14, %v1180_v39  ;;  %v408_v19 = vmul.f32 %v406_v14, %v1163_v26 }
 0x864   :  { %v440_v18 = vrot.slane %v438_v16, 6  ;;  %434 = vrot.lane.b32.xlu0 %v433_v15, %s1093_s26 }
 0x866   :  { %441 = vrot.lane.b32.xlu1 %v440_v18, %s1093_s26 }
 0x868   :  { %410 = vrot.lane.b32.xlu0 %v408_v19, %s1093_s26 }
 0x86a   :  { %420 = vrot.lane.b32.xlu1 %v418_v20, %s1093_s26  ;;  %v514_v20 = vld [vmem:[#allocation2] sm:$0xf] }
 0x8d6   :  { %v435_v22 = vpop.permute.xlu0 %434 }
 0x8d7   :  { %v437_v24 = vsub.f32 %v404_v21, %v435_v22 }
 0x8d8   :  { %v442_v25 = vpop.permute.xlu1 %441 }
 0x8d9   :  { %v444_v29 = vsub.f32 %v437_v24, %v442_v25 }
 0x8da   :  { %v411_v30 = vpop.permute.xlu0 %410 }
 0x8db   :  { %v445_v31 = vmul.f32 1.442695, %v444_v29  ;;  %v413_v32 = vsub.f32 %v404_v21, %v411_v30 }
 0x8dc   :  { %v421_v33 = vpop.permute.xlu1 %420 }
 0x8dd   :  { %998 = vpow2.f32 %v445_v31  ;;  %v423_v34 = vsub.f32 %v413_v32, %v421_v33 }
 0x8df   :  { %v424_v35 = vmul.f32 1.442695, %v423_v34 }
 0x8e1   :  { %1000 = vpow2.f32 %v424_v35 }
 0x8e7   :  { %v999_v36 = vpop.eup %998 }
 0x8e8   :  { %v448_v37 = vrot.slane %v999_v36, 2 }
 0x8ea   :  { %449 = vrot.lane.b32.xlu0 %v448_v37, %s1085_s17 }
 0x8eb   :  { %v1001_v38 = vpop.eup %1000 }
 0x8ec   :  { %427 = vrot.lane.b32.xlu1 %v1001_v38, %s1085_s17 }
 0x95c   :  { %v450_v41 = vpop.permute.xlu0 %449 }
 0x95d   :  { %v452_v42 = vmul.f32 %v450_v41, %v397_v9 }
 0x95e   :  { %v428_v43 = vpop.permute.xlu1 %427 }
 0x95f   :  { %v1288_v44 = vmul.f32 %v428_v43, %v1273_v11  ;;  %470 = vrot.lane.b32.xlu0 %v452_v42, %s1087_s18 }
 0x961   :  { %460 = vrot.lane.b32.xlu1 %v1288_v44, %s1087_s18 }
 0x9d1   :  { %v471_v45 = vpop.permute.xlu0 %470 }
 0x9d2   :  { %v486_v46 = vmul.f32 %v471_v45, %v1183_v40  ;;  %v473_v53 = vmul.f32 %v471_v45, %v1166_v27 }
 0x9d3   :  { %v461_v47 = vpop.permute.xlu1 %460 }
 0x9d4   :  { %v488_v48 = vrot.slane %v486_v46, 6  ;;  %v493_v50 = vmul.f32 %v461_v47, %v1180_v39  ;;  %v463_v52 = vmul.f32 %v461_v47, %v1163_v26 }
 0x9d6   :  { %v495_v51 = vrot.slane %v493_v50, 6  ;;  %489 = vrot.lane.b32.xlu0 %v488_v48, %s1094_s27 }
 0x9d8   :  { %496 = vrot.lane.b32.xlu1 %v495_v51, %s1094_s27 }
 0x9da   :  { %465 = vrot.lane.b32.xlu0 %v463_v52, %s1094_s27 }
 0x9dc   :  { %475 = vrot.lane.b32.xlu1 %v473_v53, %s1094_s27 }
 0xa48   :  { %v490_v56 = vpop.permute.xlu0 %489 }
 0xa49   :  { %v492_v57 = vsub.f32 %v459_v55, %v490_v56 }
 0xa4a   :  { %v497_v58 = vpop.permute.xlu1 %496 }
 0xa4b   :  { %v499_v60 = vsub.f32 %v492_v57, %v497_v58 }
 0xa4c   :  { %v466_v61 = vpop.permute.xlu0 %465 }
 0xa4d   :  { %v500_v62 = vmul.f32 1.442695, %v499_v60  ;;  %v468_v63 = vsub.f32 %v459_v55, %v466_v61  ;;  %v569_v55 = vld [vmem:[#allocation2] sm:$0xf] }
 0xa4e   :  { %v476_v1 = vpop.permute.xlu1 %475 }
 0xa4f   :  { %1002 = vpow2.f32 %v500_v62  ;;  %v478_v2 = vsub.f32 %v468_v63, %v476_v1 }
 0xa51   :  { %v479_v3 = vmul.f32 1.442695, %v478_v2 }
 0xa53   :  { %1004 = vpow2.f32 %v479_v3 }
 0xa59   :  { %v1003_v0 = vpop.eup %1002 }
 0xa5a   :  { %v503_v4 = vrot.slane %v1003_v0, 2 }
 0xa5c   :  { %504 = vrot.lane.b32.xlu0 %v503_v4, %s1086_s2 }
 0xa5d   :  { %v1005_v5 = vpop.eup %1004 }
 0xa5e   :  { %482 = vrot.lane.b32.xlu1 %v1005_v5, %s1086_s2 }
 0xace   :  { %v505_v6 = vpop.permute.xlu0 %504 }
 0xacf   :  { %v507_v7 = vmul.f32 %v505_v6, %v452_v42 }
 0xad0   :  { %v483_v8 = vpop.permute.xlu1 %482 }
 0xad1   :  { %v1304_v9 = vmul.f32 %v483_v8, %v1288_v44  ;;  %525 = vrot.lane.b32.xlu0 %v507_v7, %s1087_s18 }
 0xad3   :  { %515 = vrot.lane.b32.xlu1 %v1304_v9, %s1087_s18 }
 0xb43   :  { %v526_v10 = vpop.permute.xlu0 %525 }
 0xb44   :  { %v541_v12 = vmul.f32 %v526_v10, %v1183_v40  ;;  %v528_v19 = vmul.f32 %v526_v10, %v1166_v27 }
 0xb45   :  { %v516_v13 = vpop.permute.xlu1 %515 }
 0xb46   :  { %v543_v14 = vrot.slane %v541_v12, 6  ;;  %v548_v15 = vmul.f32 %v516_v13, %v1180_v39  ;;  %v518_v18 = vmul.f32 %v516_v13, %v1163_v26 }
 0xb48   :  { %v550_v16 = vrot.slane %v548_v15, 6  ;;  %544 = vrot.lane.b32.xlu0 %v543_v14, %s1095_s28 }
 0xb4a   :  { %551 = vrot.lane.b32.xlu1 %v550_v16, %s1095_s28 }
 0xb4c   :  { %520 = vrot.lane.b32.xlu0 %v518_v18, %s1095_s28 }
 0xb4e   :  { %530 = vrot.lane.b32.xlu1 %v528_v19, %s1095_s28 }
 0xbba   :  { %v545_v21 = vpop.permute.xlu0 %544 }
 0xbbb   :  { %v547_v22 = vsub.f32 %v514_v20, %v545_v21  ;;  %v624_v21 = vld [vmem:[#allocation2] sm:$0xf] }
 0xbbc   :  { %v552_v24 = vpop.permute.xlu1 %551 }
 0xbbd   :  { %v554_v25 = vsub.f32 %v547_v22, %v552_v24 }
 0xbbe   :  { %v521_v29 = vpop.permute.xlu0 %520 }
 0xbbf   :  { %v555_v30 = vmul.f32 1.442695, %v554_v25  ;;  %v523_v31 = vsub.f32 %v514_v20, %v521_v29 }
 0xbc0   :  { %v531_v32 = vpop.permute.xlu1 %530 }
 0xbc1   :  { %1006 = vpow2.f32 %v555_v30  ;;  %v533_v33 = vsub.f32 %v523_v31, %v531_v32 }
 0xbc3   :  { %v534_v34 = vmul.f32 1.442695, %v533_v33 }
 0xbc5   :  { %1008 = vpow2.f32 %v534_v34 }
 0xbcb   :  { %v1007_v35 = vpop.eup %1006 }
 0xbcc   :  { %v558_v36 = vrot.slane %v1007_v35, 2 }
 0xbce   :  { %559 = vrot.lane.b32.xlu0 %v558_v36, %s1096_s29 }
 0xbcf   :  { %v1009_v37 = vpop.eup %1008 }
 0xbd0   :  { %537 = vrot.lane.b32.xlu1 %v1009_v37, %s1096_s29 }
 0xc40   :  { %v560_v38 = vpop.permute.xlu0 %559 }
 0xc41   :  { %v562_v41 = vmul.f32 %v560_v38, %v507_v7 }
 0xc42   :  { %v538_v42 = vpop.permute.xlu1 %537 }
 0xc43   :  { %v1320_v43 = vmul.f32 %v538_v42, %v1304_v9  ;;  %580 = vrot.lane.b32.xlu0 %v562_v41, %s1087_s18 }
 0xc45   :  { %570 = vrot.lane.b32.xlu1 %v1320_v43, %s1087_s18 }
 0xcb5   :  { %v581_v45 = vpop.permute.xlu0 %580 }
 0xcb6   :  { %v596_v46 = vmul.f32 %v581_v45, %v1183_v40  ;;  %v583_v53 = vmul.f32 %v581_v45, %v1166_v27 }
 0xcb7   :  { %v571_v47 = vpop.permute.xlu1 %570 }
 0xcb8   :  { %v598_v48 = vrot.slane %v596_v46, 6  ;;  %v603_v50 = vmul.f32 %v571_v47, %v1180_v39  ;;  %v573_v52 = vmul.f32 %v571_v47, %v1163_v26 }
 0xcba   :  { %v605_v51 = vrot.slane %v603_v50, 6  ;;  %599 = vrot.lane.b32.xlu0 %v598_v48, %s1097_s30 }
 0xcbc   :  { %606 = vrot.lane.b32.xlu1 %v605_v51, %s1097_s30 }
 0xcbe   :  { %575 = vrot.lane.b32.xlu0 %v573_v52, %s1097_s30 }
 0xcc0   :  { %585 = vrot.lane.b32.xlu1 %v583_v53, %s1097_s30 }
 0xd2c   :  { %v600_v56 = vpop.permute.xlu0 %599 }
 0xd2d   :  { %v602_v57 = vsub.f32 %v569_v55, %v600_v56 }
 0xd2e   :  { %v607_v58 = vpop.permute.xlu1 %606 }
 0xd2f   :  { %v609_v60 = vsub.f32 %v602_v57, %v607_v58  ;;  %v679_v57 = vld [vmem:[#allocation2] sm:$0xf] }
 0xd30   :  { %v576_v61 = vpop.permute.xlu0 %575 }
 0xd31   :  { %v610_v62 = vmul.f32 1.442695, %v609_v60  ;;  %v578_v63 = vsub.f32 %v569_v55, %v576_v61 }
 0xd32   :  { %v586_v1 = vpop.permute.xlu1 %585 }
 0xd33   :  { %1010 = vpow2.f32 %v610_v62  ;;  %v588_v2 = vsub.f32 %v578_v63, %v586_v1 }
 0xd35   :  { %v589_v3 = vmul.f32 1.442695, %v588_v2 }
 0xd37   :  { %1012 = vpow2.f32 %v589_v3 }
 0xd3d   :  { %v1011_v0 = vpop.eup %1010 }
 0xd3e   :  { %v613_v4 = vrot.slane %v1011_v0, 2 }
 0xd40   :  { %614 = vrot.lane.b32.xlu0 %v613_v4, %s1098_s5 }
 0xd41   :  { %v1013_v5 = vpop.eup %1012 }
 0xd42   :  { %592 = vrot.lane.b32.xlu1 %v1013_v5, %s1098_s5 }
 0xdb2   :  { %v615_v6 = vpop.permute.xlu0 %614 }
 0xdb3   :  { %v617_v7 = vmul.f32 %v615_v6, %v562_v41 }
 0xdb4   :  { %v593_v8 = vpop.permute.xlu1 %592 }
 0xdb5   :  { %v1336_v10 = vmul.f32 %v593_v8, %v1320_v43  ;;  %635 = vrot.lane.b32.xlu0 %v617_v7, %s1087_s18 }
 0xdb7   :  { %625 = vrot.lane.b32.xlu1 %v1336_v10, %s1087_s18 }
 0xe27   :  { %v636_v12 = vpop.permute.xlu0 %635 }
 0xe28   :  { %v651_v13 = vmul.f32 %v636_v12, %v1183_v40  ;;  %v638_v20 = vmul.f32 %v636_v12, %v1166_v27 }
 0xe29   :  { %v626_v14 = vpop.permute.xlu1 %625 }
 0xe2a   :  { %v653_v15 = vrot.slane %v651_v13, 6  ;;  %v658_v16 = vmul.f32 %v626_v14, %v1180_v39  ;;  %v628_v19 = vmul.f32 %v626_v14, %v1163_v26 }
 0xe2c   :  { %v660_v18 = vrot.slane %v658_v16, 6  ;;  %654 = vrot.lane.b32.xlu0 %v653_v15, %s1099_s6 }
 0xe2e   :  { %661 = vrot.lane.b32.xlu1 %v660_v18, %s1099_s6 }
 0xe30   :  { %630 = vrot.lane.b32.xlu0 %v628_v19, %s1099_s6 }
 0xe32   :  { %640 = vrot.lane.b32.xlu1 %v638_v20, %s1099_s6 }
 0xe9e   :  { %v655_v22 = vpop.permute.xlu0 %654 }
 0xe9f   :  { %v657_v24 = vsub.f32 %v624_v21, %v655_v22 }
 0xea0   :  { %v662_v25 = vpop.permute.xlu1 %661 }
 0xea1   :  { %v664_v29 = vsub.f32 %v657_v24, %v662_v25  ;;  %v734_v25 = vld [vmem:[#allocation2] sm:$0xf] }
 0xea2   :  { %v631_v30 = vpop.permute.xlu0 %630 }
 0xea3   :  { %v665_v31 = vmul.f32 1.442695, %v664_v29  ;;  %v633_v32 = vsub.f32 %v624_v21, %v631_v30 }
 0xea4   :  { %v641_v33 = vpop.permute.xlu1 %640 }
 0xea5   :  { %1014 = vpow2.f32 %v665_v31  ;;  %v643_v34 = vsub.f32 %v633_v32, %v641_v33 }
 0xea7   :  { %v644_v35 = vmul.f32 1.442695, %v643_v34 }
 0xea9   :  { %1016 = vpow2.f32 %v644_v35 }
 0xeaf   :  { %v1015_v36 = vpop.eup %1014 }
 0xeb0   :  { %v668_v37 = vrot.slane %v1015_v36, 2 }
 0xeb2   :  { %669 = vrot.lane.b32.xlu0 %v668_v37, %s1087_s18 }
 0xeb3   :  { %v1017_v38 = vpop.eup %1016 }
 0xeb4   :  { %647 = vrot.lane.b32.xlu1 %v1017_v38, %s1087_s18 }
 0xf24   :  { %v670_v41 = vpop.permute.xlu0 %669 }
 0xf25   :  { %v672_v42 = vmul.f32 %v670_v41, %v617_v7 }
 0xf26   :  { %v648_v45 = vpop.permute.xlu1 %647 }
 0xf27   :  { %v1352_v46 = vmul.f32 %v648_v45, %v1336_v10  ;;  %690 = vrot.lane.b32.xlu0 %v672_v42, %s1087_s18 }
 0xf29   :  { %680 = vrot.lane.b32.xlu1 %v1352_v46, %s1087_s18 }
 0xf99   :  { %v691_v47 = vpop.permute.xlu0 %690 }
 0xf9a   :  { %v706_v48 = vmul.f32 %v691_v47, %v1183_v40  ;;  %v693_v56 = vmul.f32 %v691_v47, %v1166_v27 }
 0xf9b   :  { %v681_v50 = vpop.permute.xlu1 %680 }
 0xf9c   :  { %v708_v51 = vrot.slane %v706_v48, 6  ;;  %v713_v52 = vmul.f32 %v681_v50, %v1180_v39  ;;  %v683_v55 = vmul.f32 %v681_v50, %v1163_v26 }
 0xf9e   :  { %v715_v53 = vrot.slane %v713_v52, 6  ;;  %709 = vrot.lane.b32.xlu0 %v708_v51, %s1100_s7 }
 0xfa0   :  { %716 = vrot.lane.b32.xlu1 %v715_v53, %s1100_s7 }
 0xfa2   :  { %685 = vrot.lane.b32.xlu0 %v683_v55, %s1100_s7 }
 0xfa4   :  { %695 = vrot.lane.b32.xlu1 %v693_v56, %s1100_s7 }
0x1010   :  { %v710_v58 = vpop.permute.xlu0 %709 }
0x1011   :  { %v712_v60 = vsub.f32 %v679_v57, %v710_v58 }
0x1012   :  { %v717_v61 = vpop.permute.xlu1 %716 }
0x1013   :  { %v719_v62 = vsub.f32 %v712_v60, %v717_v61 }
0x1014   :  { %v686_v63 = vpop.permute.xlu0 %685 }
0x1015   :  { %v720_v1 = vmul.f32 1.442695, %v719_v62  ;;  %v688_v2 = vsub.f32 %v679_v57, %v686_v63 }
0x1016   :  { %v696_v3 = vpop.permute.xlu1 %695 }
0x1017   :  { %1018 = vpow2.f32 %v720_v1  ;;  %v698_v0 = vsub.f32 %v688_v2, %v696_v3  ;;  %v789_v1 = vld [vmem:[#allocation2] sm:$0xf] }
0x1019   :  { %v699_v4 = vmul.f32 1.442695, %v698_v0 }
0x101b   :  { %1020 = vpow2.f32 %v699_v4 }
0x1021   :  { %v1019_v5 = vpop.eup %1018 }
0x1022   :  { %v723_v6 = vrot.slane %v1019_v5, 2 }
0x1024   :  { %724 = vrot.lane.b32.xlu0 %v723_v6, %s1101_s8 }
0x1025   :  { %v1021_v7 = vpop.eup %1020 }
0x1026   :  { %702 = vrot.lane.b32.xlu1 %v1021_v7, %s1101_s8 }
0x1096   :  { %v725_v8 = vpop.permute.xlu0 %724 }
0x1097   :  { %v727_v12 = vmul.f32 %v725_v8, %v672_v42 }
0x1098   :  { %v703_v13 = vpop.permute.xlu1 %702 }
0x1099   :  { %v1362_v14 = vmul.f32 %v703_v13, %v1352_v46  ;;  %745 = vrot.lane.b32.xlu0 %v727_v12, %s1087_s18 }
0x109b   :  { %735 = vrot.lane.b32.xlu1 %v1362_v14, %s1087_s18 }
0x110b   :  { %v746_v15 = vpop.permute.xlu0 %745 }
0x110c   :  { %v761_v16 = vmul.f32 %v746_v15, %v1183_v40  ;;  %v748_v24 = vmul.f32 %v746_v15, %v1166_v27 }
0x110d   :  { %v736_v18 = vpop.permute.xlu1 %735 }
0x110e   :  { %v763_v19 = vrot.slane %v761_v16, 6  ;;  %v768_v20 = vmul.f32 %v736_v18, %v1180_v39  ;;  %v738_v22 = vmul.f32 %v736_v18, %v1163_v26 }
0x1110   :  { %v770_v21 = vrot.slane %v768_v20, 6  ;;  %764 = vrot.lane.b32.xlu0 %v763_v19, %s1102_s9 }
0x1112   :  { %771 = vrot.lane.b32.xlu1 %v770_v21, %s1102_s9 }
0x1114   :  { %740 = vrot.lane.b32.xlu0 %v738_v22, %s1102_s9 }
0x1116   :  { %750 = vrot.lane.b32.xlu1 %v748_v24, %s1102_s9 }
0x1182   :  { %v765_v29 = vpop.permute.xlu0 %764 }
0x1183   :  { %v767_v30 = vsub.f32 %v734_v25, %v765_v29 }
0x1184   :  { %v772_v31 = vpop.permute.xlu1 %771 }
0x1185   :  { %v774_v32 = vsub.f32 %v767_v30, %v772_v31 }
0x1186   :  { %v741_v33 = vpop.permute.xlu0 %740 }
0x1187   :  { %v775_v34 = vmul.f32 1.442695, %v774_v32  ;;  %v743_v35 = vsub.f32 %v734_v25, %v741_v33 }
0x1188   :  { %v751_v36 = vpop.permute.xlu1 %750 }
0x1189   :  { %1022 = vpow2.f32 %v775_v34  ;;  %v753_v37 = vsub.f32 %v743_v35, %v751_v36 }
0x118b   :  { %v754_v38 = vmul.f32 1.442695, %v753_v37 }
0x118d   :  { %1024 = vpow2.f32 %v754_v38 }
0x1193   :  { %v1023_v41 = vpop.eup %1022 }
0x1194   :  { %v778_v42 = vrot.slane %v1023_v41, 2 }
0x1196   :  { %779 = vrot.lane.b32.xlu0 %v778_v42, %s1103_s10 }
0x1197   :  { %v1025_v45 = vpop.eup %1024 }
0x1198   :  { %757 = vrot.lane.b32.xlu1 %v1025_v45, %s1103_s10 }
0x1208   :  { %v780_v47 = vpop.permute.xlu0 %779 }
0x1209   :  { %v782_v48 = vmul.f32 %v780_v47, %v727_v12 }
0x120a   :  { %v758_v50 = vpop.permute.xlu1 %757 }
0x120b   :  { %v1372_v51 = vmul.f32 %v758_v50, %v1362_v14  ;;  %800 = vrot.lane.b32.xlu0 %v782_v48, %s1087_s18 }
0x120d   :  { %790 = vrot.lane.b32.xlu1 %v1372_v51, %s1087_s18 }
0x127d   :  { %v801_v52 = vpop.permute.xlu0 %800 }
0x127e   :  { %v816_v53 = vmul.f32 %v801_v52, %v1183_v40  ;;  %v803_v60 = vmul.f32 %v801_v52, %v1166_v27 }
0x127f   :  { %v791_v55 = vpop.permute.xlu1 %790 }
0x1280   :  { %v818_v56 = vrot.slane %v816_v53, 6  ;;  %v793_v57 = vmul.f32 %v791_v55, %v1163_v26  ;;  %v823_v58 = vmul.f32 %v791_v55, %v1180_v39 }
0x1282   :  { %819 = vrot.lane.b32.xlu1 %v818_v56, %s1104_s11  ;;  %795 = vrot.lane.b32.xlu0 %v793_v57, %s1104_s11  ;;  %v825_v61 = vrot.slane %v823_v58, 6 }
0x1286   :  { %826 = vrot.lane.b32.xlu1 %v825_v61, %s1104_s11  ;;  %805 = vrot.lane.b32.xlu0 %v803_v60, %s1104_s11 }
0x12f4   :  { %v796_v62 = vpop.permute.xlu0 %795  ;;  %v820_v63 = vpop.permute.xlu1 %819 }
0x12f5   :  { %v798_v2 = vsub.f32 %v789_v1, %v796_v62  ;;  %v822_v3 = vsub.f32 %v789_v1, %v820_v63 }
0x12f8   :  { %v806_v40 = vpop.permute.xlu0 %805  ;;  %v827_v0 = vpop.permute.xlu1 %826 }
0x12f9   :  { %v808_v4 = vsub.f32 %v798_v2, %v806_v40  ;;  %v829_v5 = vsub.f32 %v822_v3, %v827_v0 }
0x12fb   :  { %v809_v6 = vmul.f32 1.442695, %v808_v4  ;;  %v830_v7 = vmul.f32 1.442695, %v829_v5 }
0x12fd   :  { %1026 = vpow2.f32 %v809_v6 }
0x12fe   :  { %1028 = vpow2.f32 %v830_v7 }
0x1307   :  { %v1027_v39 = vpop.eup %1026 }
0x1308   :  { %v1029_v8 = vpop.eup %1028  ;;  %812 = vrot.lane.b32.xlu0 %v1027_v39, %s1105_s12 }
0x1309   :  { %v833_v12 = vrot.slane %v1029_v8, 2 }
0x130b   :  { %834 = vrot.lane.b32.xlu1 %v833_v12, %s1105_s12 }
0x137a   :  { %v813_v13 = vpop.permute.xlu0 %812 }
0x137b   :  { %v815_v15 = vmul.f32 %v813_v13, %v1372_v51 }
0x137d   :  { %v835_v16 = vpop.permute.xlu1 %834  ;;  %845 = vrot.lane.b32.xlu0 %v815_v15, %s1087_s18 }
0x137e   :  { %v837_v18 = vmul.f32 %v835_v16, %v782_v48 }
0x1380   :  { %855 = vrot.lane.b32.xlu1 %v837_v18, %s1087_s18 }
0x13ef   :  { %v846_v19 = vpop.permute.xlu0 %845 }
0x13f0   :  { %v848_v20 = vmul.f32 %v846_v19, %v1163_v26 }
0x13f2   :  { %v856_v21 = vpop.permute.xlu1 %855  ;;  %850 = vrot.lane.b32.xlu0 %v848_v20, %s1106_s13 }
0x13f3   :  { %v858_v22 = vmul.f32 %v856_v21, %v1166_v27 }
0x13f5   :  { %860 = vrot.lane.b32.xlu1 %v858_v22, %s1106_s13 }
0x13f9   :  { %133 = vrot.lane.b32.xlu1 %v1193_v59, %s1098_s5  ;;  %v844_v59 = vld [vmem:[#allocation2] sm:$0xf] }
0x13fd   :  { %243 = vrot.lane.b32.xlu1 %v1226_v54, %s1086_s2 }
0x1401   :  { %399 = vrot.lane.b32.xlu1 %v1273_v11, %s1089_s1 }
0x1405   :  { %509 = vrot.lane.b32.xlu1 %v1304_v9, %s1092_s25 }
0x1409   :  { %619 = vrot.lane.b32.xlu1 %v1336_v10, %s1088_s0 }
0x140d   :  { %729 = vrot.lane.b32.xlu1 %v1362_v14, %s1094_s27 }
0x1411   :  { %839 = vrot.lane.b32.xlu1 %v815_v15, %s1097_s30 }
0x1415   :  { %885 = vperm.xlu1 %972, %v1163_v26  }
0x1464   :  { %v851_v24 = vpop.permute.xlu0 %850 }
0x1465   :  { %v853_v25 = vsub.f32 %v844_v59, %v851_v24 }
0x1467   :  { %v861_v54 = vpop.permute.xlu1 %860 }
0x1468   :  { %v863_v29 = vsub.f32 %v853_v25, %v861_v54 }
0x146a   :  { %v864_v11 = vmul.f32 1.442695, %v863_v29 }
0x146b   :  { %v134_v30 = vpop.permute.xlu1 %133 }
0x146c   :  { %1030 = vpow2.f32 %v864_v11  ;;  %137 = vst.msk [vmem:[#allocation3] sm:$0x3] %vm136_vm4, %v134_v30  ;;  %vm842_vm4 = vcmask 115824  }
0x146f   :  { %v244_v26 = vpop.permute.xlu1 %243 }
0x1473   :  { %v400_v14 = vpop.permute.xlu1 %399 }
0x1476   :  { %v1031_v9 = vpop.eup %1030 }
0x1477   :  { %867 = vrot.lane.b32.xlu0 %v1031_v9, %s1107_s14 }
0x147b   :  { %188 = vrot.lane.b32.xlu0 %v1210_v23, %s1096_s29 }
0x147f   :  { %298 = vrot.lane.b32.xlu0 %v1242_v17, %s1085_s17  ;;  %v510_v17 = vpop.permute.xlu1 %509  ;;  %s1034_s17 = scalar_lea.vmem %s921_s16, 32 }
0x1480   :  { %p1035_p0 = scmp.ne.s32.totalorder %s921_s16, %s1034_s17  ;;  %p1040_p2 = scmp.lt.s32.totalorder %s1034_s17, %s1034_s17 }
0x1482   :  { %p1041_p3 = por %p1040_p2, %p1039_p1 }
0x1483   :  { %454 = vrot.lane.b32.xlu0 %v1288_v44, %s1091_s24 }
0x1484   :  { %p1042_p4 = pnand %p1041_p3, %p1035_p0 }
0x1487   :  { %564 = vrot.lane.b32.xlu0 %v1320_v43, %s1090_s23 }
0x148b   :  { %674 = vrot.lane.b32.xlu0 %v1352_v46, %s1093_s26  ;;  %v620_v46 = vpop.permute.xlu1 %619 }
0x148f   :  { %784 = vrot.lane.b32.xlu0 %v1372_v51, %s1095_s28 }
0x14e9   :  { %v868_v10 = vpop.permute.xlu0 %867 }
0x14ea   :  { %v870_v31 = vmul.f32 %v868_v10, %v815_v15 }
0x14ec   :  { %872 = vrot.lane.b32.xlu0 %v870_v31, %s1099_s6 }
0x14ed   :  { %v189_v23 = vpop.permute.xlu0 %188 }
0x14ee   :  { %192 = vst.msk [vmem:[#allocation3] sm:$0x3] %vm191_vm5, %v189_v23  ;;  %vm875_vm5 = vcmask 124024  }
0x14ef   :  { %247 = vst.msk [vmem:[#allocation3] sm:$0x3] %vm246_vm6, %v244_v26 }
0x14f0   :  { %891 = vperm.xlu0 %973, %v1166_v27   ;;  %v730_v27 = vpop.permute.xlu1 %729 }
0x14f1   :  { %v299_v44 = vpop.permute.xlu0 %298 }
0x14f2   :  { %302 = vst.msk [vmem:[#allocation3] sm:$0x3] %vm301_vm7, %v299_v44 }
0x14f3   :  { %353 = vst.msk [vmem:[#allocation3] sm:$0x3] %vm352_vm8, %v1258_v49 }
0x14f4   :  { %403 = vst.msk [vmem:[#allocation3] sm:$0x3] %vm402_vm9, %v400_v14  ;;  %v840_v34 = vpop.permute.xlu1 %839 }
0x14f5   :  { %v455_v43 = vpop.permute.xlu0 %454 }
0x14f6   :  { %458 = vst.msk [vmem:[#allocation3] sm:$0x3] %vm457_vm10, %v455_v43 }
0x14f7   :  { %513 = vst.msk [vmem:[#allocation3] sm:$0x3] %vm512_vm11, %v510_v17 }
0x14f9   :  { %v565_v32 = vpop.permute.xlu0 %564 }
0x14fa   :  { %568 = vst.msk [vmem:[#allocation3] sm:$0x3] %vm567_vm12, %v565_v32 }
0x14fb   :  { %623 = vst.msk [vmem:[#allocation3] sm:$0x3] %vm622_vm13, %v620_v46 }
0x14fd   :  { %v675_v33 = vpop.permute.xlu0 %674 }
0x14fe   :  { %678 = vst.msk [vmem:[#allocation3] sm:$0x3] %vm677_vm14, %v675_v33 }
0x14ff   :  { %733 = vst.msk [vmem:[#allocation3] sm:$0x3] %vm732_vm15, %v730_v27 }
0x1501   :  { %v785_v49 = vpop.permute.xlu0 %784 }
0x1502   :  { %788 = vst.msk [vmem:[#allocation3] sm:$0x3] %vm787_vm1, %v785_v49 }
0x1503   :  { %843 = vst.msk [vmem:[#allocation3] sm:$0x3] %vm842_vm4, %v840_v34 }
0x155e   :  { %v873_v35 = vpop.permute.xlu0 %872 }
0x155f   :  { %876 = vst.msk [vmem:[#allocation3] sm:$0x3] %vm875_vm5, %v873_v35 }
0x1560   :  { %1045 = shalt.err (!%p1042_p4)
}
0x1561   :  { %s1046_s19 = scalar_lea.hbm %s1447_s3, 32 }
0x1562   :  { %p1047_p5 = scmp.ne.s32.totalorder %s1447_s3, %s1046_s19  ;;  %p1050_p6 = scmp.lt.u32.totalorder %s1046_s19, %s1447_s3 }
0x1564   :  { %p1052_p7 = pnand %p1050_p6, %p1047_p5 }
0x1566   :  { %1055 = shalt.err (!%p1052_p7)
}
0x1567   :  { %923 = dma.vmem_to_hbm [thread:$0]  %s921_s16, 32, %s1447_s3, [#allocation4]   ;;  %v877_v36 = vld [vmem:[#allocation3] sm:$0x3]  ;;  %v886_v37 = vpop.permute.xlu1 %885  ;;  %vm911_vm6 = vcmask 1042432  }
0x1568   :  { %v879_v38 = vrot.slane %v877_v36, 1  ;;  %v881_v41 = vrot.slane %v877_v36, 7  ;;  %v888_v42 = vmul.f32 %v886_v37, %v877_v36  ;;  %s1109_s3 = smov [#allocation5]  }
0x1569   :  { %s930_s24 = sshll.u32 %s1109_s3, 4  ;;  %s931_s24 = int_to_ptr.vmem [resolvable:$true] %s930_s24 }
0x156a   :  { %v883_v47 = vsel %vm33_vm0, %v879_v38, %v881_v41  ;;  %v889_v48 = vsub.f32 %v1168_v28, %v888_v42  ;;  %v898_v55 = vsub.f32 1.0, %v888_v42  ;;  %s1056_s25 = scalar_lea.vmem %s931_s24, 64  ;;  %p1061_p9 = scmp.lt.s32.totalorder %s931_s24, %s931_s24 }
0x156b   :  { %p1057_p8 = scmp.ne.s32.totalorder %s931_s24, %s1056_s25  ;;  %p1062_p10 = scmp.lt.s32.totalorder %s1056_s25, %s1056_s25 }
0x156d   :  { %p1063_p11 = por %p1062_p10, %p1061_p9 }
0x156f   :  { %v892_v45 = vpop.permute.xlu0 %891  ;;  %p1064_p12 = pnand %p1063_p11, %p1057_p8 }
0x1570   :  { %v894_v50 = vmul.f32 %v892_v45, %v883_v47  ;;  %v900_v53 = vmul.f32 %v892_v45, %v877_v36 }
0x1572   :  { %v895_v51 = vsub.f32 %v889_v48, %v894_v50  ;;  %v901_v56 = vsub.f32 0.0, %v900_v53 }
0x1574   :  { %v896_v52 = vmul.f32 1.442695, %v895_v51 }
0x1576   :  { %1032 = vpow2.f32 %v896_v52 }
0x1580   :  { %v1033_v57 = vpop.eup %1032 }
0x1581   :  { %v902_v58 = vmul.f32 %v1033_v57, %v901_v56  ;;  %v899_v60 = vmul.f32 %v1033_v57, %v898_v55 }
0x1583   :  { %v904_v61 = vrot.slane %v902_v58, 7  ;;  %v907_v62 = vrot.slane %v899_v60, 6 }
0x1585   :  { %v909_v63 = vsel %vm33_vm0, %v899_v60, %v904_v61 }
0x1586   :  { %v910_v1 = vsel %vm84_vm2, %v909_v63, %v904_v61 }
0x1587   :  { %v912_v28 = vsel %vm911_vm6, %v910_v1, %v907_v62 }
0x1588   :  { %913 = vst.msk [vmem:[#allocation5] sm:$0xf] %vm86_vm3, %v912_v28 }
0x1589   :  { %1067 = shalt.err (!%p1064_p12)
}
0x158a   :  { %s1068_s28 = scalar_lea.hbm %s1448_s4, 64 }
0x158b   :  { %p1069_p13 = scmp.ne.s32.totalorder %s1448_s4, %s1068_s28  ;;  %p1072_p0 = scmp.lt.u32.totalorder %s1068_s28, %s1448_s4 }
0x158d   :  { %p1074_p1 = pnand %p1072_p0, %p1069_p13 }
0x158f   :  { %1077 = shalt.err (!%p1074_p1)
}
0x1590   :  { %933 = dma.vmem_to_hbm [thread:$0]  %s931_s24, 64, %s1448_s4, [#allocation6]  }
0x1591   :  { %1078 = dma.done.wait [#allocation4], 32  }
0x1592   :  { %1079 = vsyncadd [#allocation4], 4294967264 }
0x1593   :  { %1080 = dma.done.wait [#allocation6], 64  }
0x1594   :  { %1081 = vsyncadd [#allocation6], 4294967232 }
0x1595   :  { %940 = vsyncpa [#allocation4], 1 }
0x1596   :  { %941 = vsyncpa [#allocation6], 1 }

</bundles_post_ra>
